<compile_context>
chip_gen: v7x
topology: tpu7x:2x2x1
jax: 0.10.0
libtpu: 0.0.40
codegen_flags: <defaults>
</compile_context>

<pallas_src>
import functools

import jax
import jax.numpy as jnp
import jax.scipy.linalg
from jax import lax
from jax.experimental import pallas as pl
from jax.experimental.pallas import tpu as pltpu


def _round_up(x, m):
    return ((x + m - 1) // m) * m


def _detect_megacore():
    """Best effort: 2 TensorCores per chip only on v7x; otherwise 1."""
    try:
        kind = jax.devices()[0].device_kind.lower()
    except Exception:
        return 1
    return 2 if ("v7" in kind or "7x" in kind) else 1


def golem_gram(X, *, tn=None, ncores=None, tile_budget_bytes=12 << 20):
    """Returns S = X^T X as a (d, d) float32 matrix via a streaming Pallas kernel."""
    n, d = X.shape
    X = X.astype(jnp.float32)

    if ncores is None:
        ncores = _detect_megacore()
        if n < ncores * 1024:   # don't split tiny problems across cores
            ncores = 1
    ncores = max(1, int(ncores))

    rows_per_core = pl.cdiv(n, ncores)

    # VMEM cost of a (tn, d) f32 tile includes lane padding of the minor dim to 128.
    d_lanes = _round_up(d, 128)
    if tn is None:
        tn_max = max(128, (tile_budget_bytes // (d_lanes * 4)) // 128 * 128)
    else:
        tn_max = max(128, _round_up(int(tn), 128))

    if rows_per_core <= tn_max:
        tn = _round_up(rows_per_core, 128)
    else:
        # Near-equal tiles per core: avoids a mostly-empty (zero-masked) final tile.
        n_tiles = pl.cdiv(rows_per_core, tn_max)
        tn = _round_up(pl.cdiv(rows_per_core, n_tiles), 128)

    tiles_per_core = pl.cdiv(rows_per_core, tn)
    tiles_total = pl.cdiv(n, tn)
    need_mask = (ncores * tiles_per_core * tn) != n   # static

    def kernel(x_ref, s_ref):
        p = pl.program_id(0)   # core-split axis ("parallel")
        i = pl.program_id(1)   # sample-tile reduction axis ("arbitrary", last)

        @pl.when(i == 0)
        def _():
            s_ref[...] = jnp.zeros_like(s_ref)

        x = x_ref[...]                                            # (tn, d) f32
        if need_mask:
            # Zero out rows beyond n (covers the ragged last tile and any fully
            # out-of-range tiles whose DMA index was clamped below).
            t = p * tiles_per_core + i                            # logical tile id
            rows = t * tn + lax.broadcasted_iota(jnp.int32, (tn, 1), 0)
            x = jnp.where(rows < n, x, 0.0)

        # S += x^T x : one MXU matmul with contraction K = tn, f32 accumulation.
        s_ref[...] += lax.dot_general(
            x, x,
            dimension_numbers=(((0,), (0,)), ((), ())),
            preferred_element_type=jnp.float32,
        )[None]

    def x_index_map(p, i):
        # Clamp the DMA to an in-range block; clamped (duplicated) data is fully
        # masked to zero in the kernel, so this is safe.
        return (jnp.minimum(p * tiles_per_core + i, tiles_total - 1), 0)

    tile_vmem = _round_up(tn, 8) * d_lanes * 4
    acc_vmem = _round_up(d, 8) * d_lanes * 4
    vmem_limit = int(min(2 * tile_vmem + 2 * acc_vmem + (8 << 20), 56 << 20))

    s_parts = pl.pallas_call(
        kernel,
        out_shape=jax.ShapeDtypeStruct((ncores, d, d), jnp.float32),
        grid_spec=pltpu.PrefetchScalarGridSpec(
            num_scalar_prefetch=0,
            grid=(ncores, tiles_per_core),
            in_specs=[
                # Native-layout X tile: fully contiguous (tn, d) DMA, double-buffered.
                pl.BlockSpec((tn, d), x_index_map),
            ],
            # Per-core Gram accumulator, resident across the inner reduction axis.
            out_specs=pl.BlockSpec((1, d, d), lambda p, i: (p, 0, 0)),
        ),
        compiler_params=pltpu.CompilerParams(
            dimension_semantics=("parallel", "arbitrary"),
            vmem_limit_bytes=vmem_limit,
        ),
    )(X)

    return jnp.sum(s_parts, axis=0)                               # (d, d)


@functools.partial(
    jax.jit,
    static_argnames=("equal_variances", "lambdaa", "lambdab", "tn", "ncores"),
)
def golem_forward(X, W, *, equal_variances=True, lambdaa=0.001, lambdab=0.001,
                  tn=None, ncores=None):
    n, d = X.shape
    S = golem_gram(X, tn=tn, ncores=ncores)                       # (d, d) = X^T X

    A = jnp.eye(d, dtype=jnp.float32) - W.astype(jnp.float32)     # I - W
    # colsq[j] = sum_i (X - X W)_{ij}^2 = (A^T S A)_{jj}; clamp tiny negative
    # rounding noise (reference is always >= 0).
    colsq = jnp.maximum(jnp.sum(A * (S @ A), axis=0), 0.0)        # (d,)

    if equal_variances:
        # 0.5 * d * log(||X - X@W||_F^2)
        lik_first = 0.5 * d * jnp.log(jnp.sum(colsq))
    else:
        # 0.5 * sum_j log(sum_i (X - X@W)_{ij}^2)
        lik_first = 0.5 * jnp.sum(jnp.log(colsq))

    _, logabsdet = jnp.linalg.slogdet(jnp.eye(d, dtype=W.dtype) - W)
    likelihood = lik_first - logabsdet

    L1_penalty = jnp.sum(jnp.abs(W))
    h = jnp.trace(jax.scipy.linalg.expm(W * W)) - d
    score = likelihood + lambdaa * L1_penalty + lambdab * h
    return score, likelihood, h, W


def golem_forward_ref(X, W, *, equal_variances=True, lambdaa=0.001, lambdab=0.001):
    """Pure-JAX reference matching the PyTorch module semantics."""
    n, d = X.shape
    R = X - X @ W
    if equal_variances:
        lik_first = 0.5 * d * jnp.log(jnp.sum(R * R))
    else:
        lik_first = 0.5 * jnp.sum(jnp.log(jnp.sum(R * R, axis=0)))
    _, logabsdet = jnp.linalg.slogdet(jnp.eye(d, dtype=W.dtype) - W)
    likelihood = lik_first - logabsdet
    L1_penalty = jnp.sum(jnp.abs(W))
    h = jnp.trace(jax.scipy.linalg.expm(W * W)) - d
    score = likelihood + lambdaa * L1_penalty + lambdab * h
    return score, likelihood, h, W


if __name__ == "__main__":
    # Golem(dims=(d, n)): w_est is a (d, d) parameter, X is (n, d).
    # n=500 is deliberately not a multiple of the tile size to exercise the
    # in-kernel ragged-row masking; the forced (tn=128, ncores=2) config also
    # exercises the multi-tile reduction, the core split and index clamping.
    d, n = 16, 500

    key = jax.random.PRNGKey(0)
    kx, kw = jax.random.split(key)
    X = jax.random.normal(kx, (n, d), dtype=jnp.float32)
    # The PyTorch module inits w_est to zeros; small nonzero values exercise the
    # kernel while keeping I - W well conditioned.
    W = 0.05 * jax.random.normal(kw, (d, d), dtype=jnp.float32)

    configs = (
        dict(tn=None, ncores=None),   # adaptive tile / auto core split
        dict(tn=128, ncores=1),       # multi-tile reduction + ragged mask
        dict(tn=128, ncores=2),       # forced 2-way split + clamped OOB tile
    )

    for ev in (True, False):
        score_r, lik_r, h_r, _ = golem_forward_ref(
            X, W, equal_variances=ev, lambdaa=0.001, lambdab=0.001
        )
        for cfg in configs:
            score, likelihood, h, w_out = golem_forward(
                X, W, equal_variances=ev, lambdaa=0.001, lambdab=0.001, **cfg
            )
            jax.block_until_ready((score, likelihood, h, w_out))
            assert jnp.allclose(score, score_r, rtol=1e-4, atol=1e-4), (ev, cfg, score, score_r)
            assert jnp.allclose(likelihood, lik_r, rtol=1e-4, atol=1e-4), (ev, cfg, likelihood, lik_r)
            assert jnp.allclose(h, h_r, rtol=1e-5, atol=1e-6), (ev, cfg, h, h_r)

    print("KERNEL_OK")
</pallas_src>

<mosaic_0001>
module attributes {stable_mosaic.version = 11 : i64} {
  func.func @kernel(%arg0: i32, %arg1: i32, %arg2: memref<512x16xf32, #tpu.memory_space<vmem>>, %arg3: memref<1x16x16xf32, #tpu.memory_space<vmem>>) attributes {dimension_semantics = [#tpu.dimension_semantics<parallel>, #tpu.dimension_semantics<arbitrary>], iteration_bounds = array<i64: 1, 1>, scalar_prefetch = 0 : i64, scratch_operands = 0 : i64, tpu.core_type = #tpu.core_type<tc>, window_params = [{transform_indices = @transform_0, window_bounds = array<i64: 512, 16>}, {transform_indices = @transform_1, window_bounds = array<i64: 1, 16, 16>}]} {
    %c0_i32 = arith.constant 0 : i32
    %0 = arith.cmpi eq, %arg1, %c0_i32 : i32
    %1 = arith.extui %0 : i1 to i32
    %c0_i32_0 = arith.constant 0 : i32
    %2 = arith.cmpi ne, %1, %c0_i32_0 : i32
    scf.if %2 {
      %cst_9 = arith.constant 0.000000e+00 : f32
      %21 = vector.broadcast %cst_9 : f32 to vector<1x16x16xf32>
      %c0_10 = arith.constant 0 : index
      %c0_11 = arith.constant 0 : index
      %c0_12 = arith.constant 0 : index
      %22 = vector.load %arg3[%c0_10, %c0_11, %c0_12] : memref<1x16x16xf32, #tpu.memory_space<vmem>>, vector<1x16x16xf32>
      tpu.vector_store %arg3[%c0_10, %c0_11, %c0_12], %21 {strides = array<i32>} : memref<1x16x16xf32, #tpu.memory_space<vmem>>, vector<1x16x16xf32>,
    } else {
    }
    %c0 = arith.constant 0 : index
    %c0_1 = arith.constant 0 : index
    %3 = vector.load %arg2[%c0, %c0_1] : memref<512x16xf32, #tpu.memory_space<vmem>>, vector<512x16xf32>
    %c1_i32 = arith.constant 1 : i32
    %4 = arith.muli %arg0, %c1_i32 : i32
    %5 = arith.addi %4, %arg1 : i32
    %c512_i32 = arith.constant 512 : i32
    %6 = arith.muli %5, %c512_i32 : i32
    %7 = tpu.iota {dimensions = array<i32: 0>} : vector<512x1xi32>
    %8 = vector.broadcast %6 : i32 to vector<512x1xi32>
    %9 = arith.addi %8, %7 : vector<512x1xi32>
    %c500_i32 = arith.constant 500 : i32
    %10 = vector.broadcast %c500_i32 : i32 to vector<512x1xi32>
    %11 = arith.cmpi slt, %9, %10 : vector<512x1xi32>
    %cst = arith.constant 0.000000e+00 : f32
    %12 = vector.shape_cast %11 : vector<512x1xi1> to vector<512x1xi1>
    %13 = vector.broadcast %12 : vector<512x1xi1> to vector<512x16xi1>
    %14 = vector.broadcast %cst : f32 to vector<512x16xf32>
    %15 = arith.select %13, %3, %14 : vector<512x16xi1>, vector<512x16xf32>
    %c0_2 = arith.constant 0 : index
    %c0_3 = arith.constant 0 : index
    %c0_4 = arith.constant 0 : index
    %16 = vector.load %arg3[%c0_2, %c0_3, %c0_4] : memref<1x16x16xf32, #tpu.memory_space<vmem>>, vector<1x16x16xf32>
    %cst_5 = arith.constant dense<0.000000e+00> : vector<16x16xf32>
    %17 = tpu.matmul %15, %15, %cst_5 {dimension_numbers = #tpu.dot_dimension_numbers<[0], [0], [1], [1], [0, 1, 1, 1], [], []>} : vector<512x16xf32>, vector<512x16xf32>, vector<16x16xf32> -> vector<16x16xf32>
    %18 = vector.shape_cast %17 : vector<16x16xf32> to vector<1x16x16xf32>
    %19 = arith.addf %16, %18 : vector<1x16x16xf32>
    %c0_6 = arith.constant 0 : index
    %c0_7 = arith.constant 0 : index
    %c0_8 = arith.constant 0 : index
    %20 = vector.load %arg3[%c0_6, %c0_7, %c0_8] : memref<1x16x16xf32, #tpu.memory_space<vmem>>, vector<1x16x16xf32>
    tpu.vector_store %arg3[%c0_6, %c0_7, %c0_8], %19 {strides = array<i32>} : memref<1x16x16xf32, #tpu.memory_space<vmem>>, vector<1x16x16xf32>,
    return
  }
  func.func @transform_0(%arg0: i32, %arg1: i32) -> (i32, i32) {
    %c1_i32 = arith.constant 1 : i32
    %0 = arith.muli %arg0, %c1_i32 : i32
    %1 = arith.addi %0, %arg1 : i32
    %c0_i32 = arith.constant 0 : i32
    %2 = arith.minsi %1, %c0_i32 : i32
    %c0_i32_0 = arith.constant 0 : i32
    %c0_i32_1 = arith.constant 0 : i32
    return %2, %c0_i32_0 : i32, i32
  }
  func.func @transform_1(%arg0: i32, %arg1: i32) -> (i32, i32, i32) {
    %c0_i32 = arith.constant 0 : i32
    %c0_i32_0 = arith.constant 0 : i32
    %c0_i32_1 = arith.constant 0 : i32
    return %arg0, %c0_i32, %c0_i32_0 : i32, i32, i32
  }
}

</mosaic_0001>

<bundles_post_ra>
// kernel: custom-call.15
= control target key start
LH: loop header
LB: loop body
LE: loop exit
PB: predicated region body
PF: predicated region fallthrough
CT: control target
= control target key end

     0   :  { %5 = vsyncpa [#allocation4], 0  ;;  %s834_s0 = inlined_call_operand.vmem [shape: f32[16,16], index: 0, kind: input, shape index: {}]   ;;  %s835_s1 = inlined_call_operand.vmem [shape: f32[16,16], index: 1, kind: output, shape index: {0}]   ;;  %s836_s2 = inlined_call_operand.hbm [shape: s32[16], index: 2, kind: output, shape index: {1}]   ;;  %s837_s3 = inlined_call_operand.hbm [shape: s32[16], index: 3, kind: output, shape index: {2}]  }
   0x1   :  { %6 = vsyncpa [#allocation7], 0  ;;  %s20_s14 = scalar_lea.vmem %s834_s0, 8 }
   0x2   :  { %p399_p0 = scmp.gt.s32.totalorder %s834_s0, %s20_s14 }
   0x3   :  { %s694_s17 = smov (!%p399_p0), [#allocation0]   ;;  %s698_s20 = smov (!%p399_p0), %s834_s0  }
   0x4   :  { %400 = sbr.rel (%p399_p0) target bundleno = 21 (0x15), region = 128 }
   0xb LB: > { %v54_v0 = vld [vmem:[%s700_s20] sm:$0xff]  ;;  %s56_s20 = scalar_lea.vmem %s700_s20, 8   ;;  %s700_s20 = sphi %s698_s20, %s56_s20   ;;  %s696_s17 = sphi %s694_s17, %s57_s17  }
   0xc   : > { %55 = vst [vmem:[%s696_s17] sm:$0xff] %v54_v0  ;;  %s57_s17 = scalar_lea.vmem %s696_s17, 8   ;;  %p51_p1 = scmp.gt.s32.totalorder %s56_s20, %s20_s14 }
   0xe   :  { %53 = sbr.rel (!%p51_p1) target bundleno = 11 (0xb), region = 134 }
  0x15 PF:  { %v69_v1 = vld [vmem:[#allocation0] sm:$0xff]  ;;  %v73_v2 = vld [vmem:[#allocation0 + $0x8] sm:$0xff]  ;;  %v76_v3 = vlaneseq  ;;  %v718_v4 = vmov 0   ;;  %s702_s0 = smov 0  }
  0x16   :  { %70 = vst [vmem:[#allocation1] sm:$0xff] %v69_v1  ;;  %74 = vst [vmem:[#allocation1 + $0x8] sm:$0xff] %v73_v2 }
  0x17   :  { %75 = vst [vmem:[#allocation2] sm:$0x1] %v718_v4  ;;  %v751_v5 = vshrl.u32 %v76_v3, 7 }
  0x18 LB: > { %s437_s21 = sshll.u32 %s704_s0, 3  ;;  %s84_s0 = sadd.s32 1, %s704_s0   ;;  %s704_s0 = sphi %s702_s0, %s84_s0  }
  0x19   : > { %v88_v6 = vstv %s437_s21  ;;  %s86_s22 = scalar_lea.vmem [#allocation8], %s437_s21  ;;  %p81_p2 = scmp.ge.s32.totalorder %s84_s0, 2  }
  0x1a   : > { %v89_v7 = vadd.s32 %v88_v6, %v751_v5  ;;  %s754_s23 = smov (%p81_p2), 0  }
  0x1b   :  { %83 = sbr.rel (!%p81_p2) target bundleno = 24 (0x18), region = 145 }
  0x1c   : > { %90 = vst [vmem:[%s86_s22] sm:$0xff] %v89_v7 }
  0x22 LB: > { %v101_v8 = vld [vmem:[#allocation1] sm:$0xff]  ;;  %v113_v9 = vld [vmem:[#allocation1 + $0x8] sm:$0xff]  ;;  %v760_v10 = vadd.s32 8, %v751_v5  ;;  %v763_v12 = vstv %s708_s23  ;;  %s159_s24 = ssub.s32 128, %s708_s23  ;;  %v165_v45 = vand.u32 127, %v76_v3  ;;  %s171_s25 = scalar_lea.vmem [#allocation1], %s708_s23  ;;  %s708_s23 = sphi %s754_s23, %s96_s23  }
  0x23   : > { %v102_v11 = vand.u32 2147483647, %v101_v8  ;;  %v114_v13 = vand.u32 2147483647, %v113_v9  ;;  %vm105_vm0 = vcmp.ge.s32.totalorder %v751_v5, %v763_v12  ;;  %v168_v48 = vld [vmem:[#allocation2] ss:$0 sm:$0xff] }
  0x24   : > { %vm117_vm3 = vcmp.ge.s32.totalorder %v760_v10, %v763_v12  ;;  %vm189_vm13 = vcmp.gt.s32.totalorder %v165_v45, %v763_v12  ;;  %vm212_vm14 = vcmp.gt.s32.totalorder %v760_v10, %v763_v12  ;;  %vm166_vm15 = vcmp.eq.s32.totalorder %v165_v45, %v763_v12  ;;  %v173_v49 = vld [vmem:[%s171_s25] ss:$0 sm:$0xff]  ;;  %s177_s27 = scalar_lea.vmem [#allocation8], %s708_s23  ;;  %s96_s23 = sadd.s32 1, %s708_s23  }
  0x25   : > { %vm439_vm1 = vcmp.gt.f32.partialorder %v102_v11, -inf  ;;  %v179_v50 = vld [vmem:[%s177_s27] ss:$0 sm:$0xff]  ;;  %p93_p3 = scmp.ge.s32.totalorder %s96_s23, 16  }
  0x26   : > { %vm109_vm2 = vmand %vm105_vm0, %vm439_vm1  ;;  %s710_s5 = smov (%p93_p3), %s835_s1   ;;  %s714_s6 = smov (%p93_p3), [#allocation1]  }
  0x27   : > { %v110_v14 = vsel %vm109_vm2, %v751_v5, %v763_v12  ;;  %v111_v15 = vsel %vm109_vm2, %v102_v11, -inf  ;;  %vm783_vm0 = vmand %vm212_vm14, %vm166_vm15  ;;  %vm197_vm2 = vcmp.gt.s32.totalorder %v751_v5, %v763_v12 }
  0x28   : > { %vm120_vm4 = vcmp.lt.f32.partialorder %v111_v15, %v114_v13 }
  0x29   : > { %vm121_vm5 = vmand %vm117_vm3, %vm120_vm4 }
  0x2a   : > { %v122_v16 = vsel %vm121_vm5, %v760_v10, %v110_v14  ;;  %v123_v17 = vsel %vm121_vm5, %v114_v13, %v111_v15  ;;  %vm201_vm4 = vmand %vm197_vm2, %vm166_vm15 }
  0x2b   : > { %v124_v18 = vrot.slane %v123_v17, 1  ;;  %v125_v19 = vrot.slane %v122_v16, 1 }
  0x2d   : > { %vm126_vm6 = vcmp.ge.f32.partialorder %v124_v18, %v123_v17  ;;  %v129_v20 = vrot.slane %v124_v18, 1  ;;  %v130_v21 = vrot.slane %v125_v19, 1 }
  0x2e   : > { %v127_v22 = vsel %vm126_vm6, %v124_v18, %v123_v17  ;;  %v128_v23 = vsel %vm126_vm6, %v125_v19, %v122_v16 }
  0x2f   : > { %vm131_vm7 = vcmp.ge.f32.partialorder %v129_v20, %v127_v22  ;;  %v134_v24 = vrot.slane %v129_v20, 1  ;;  %v135_v25 = vrot.slane %v130_v21, 1 }
  0x30   : > { %v132_v26 = vsel %vm131_vm7, %v129_v20, %v127_v22  ;;  %v133_v27 = vsel %vm131_vm7, %v130_v21, %v128_v23 }
  0x31   : > { %vm136_vm8 = vcmp.ge.f32.partialorder %v134_v24, %v132_v26  ;;  %v139_v28 = vrot.slane %v134_v24, 1  ;;  %v140_v29 = vrot.slane %v135_v25, 1 }
  0x32   : > { %v137_v30 = vsel %vm136_vm8, %v134_v24, %v132_v26  ;;  %v138_v31 = vsel %vm136_vm8, %v135_v25, %v133_v27 }
  0x33   : > { %vm141_vm9 = vcmp.ge.f32.partialorder %v139_v28, %v137_v30  ;;  %v144_v32 = vrot.slane %v139_v28, 1  ;;  %v145_v33 = vrot.slane %v140_v29, 1 }
  0x34   : > { %v142_v34 = vsel %vm141_vm9, %v139_v28, %v137_v30  ;;  %v143_v35 = vsel %vm141_vm9, %v140_v29, %v138_v31 }
  0x35   : > { %vm146_vm10 = vcmp.ge.f32.partialorder %v144_v32, %v142_v34  ;;  %v149_v36 = vrot.slane %v144_v32, 1  ;;  %v150_v37 = vrot.slane %v145_v33, 1 }
  0x36   : > { %v147_v38 = vsel %vm146_vm10, %v144_v32, %v142_v34  ;;  %v148_v39 = vsel %vm146_vm10, %v145_v33, %v143_v35 }
  0x37   : > { %vm151_vm11 = vcmp.ge.f32.partialorder %v149_v36, %v147_v38  ;;  %v154_v40 = vrot.slane %v149_v36, 1  ;;  %v155_v41 = vrot.slane %v150_v37, 1 }
  0x38   : > { %v152_v42 = vsel %vm151_vm11, %v149_v36, %v147_v38  ;;  %v153_v43 = vsel %vm151_vm11, %v150_v37, %v148_v39 }
  0x39   : > { %vm156_vm12 = vcmp.ge.f32.partialorder %v154_v40, %v152_v42 }
  0x3a   : > { %v158_v44 = vsel %vm156_vm12, %v155_v41, %v153_v43 }
  0x3b   : > { %160 = vrot.lane.b32.xlu0 %v158_v44, %s159_s24 }
  0xad   : > { %v161_v47 = vpop.permute.xlu0 %160 }
  0xae   : > { %444 = vpush %v161_v47 }
  0xdf   : > { %s445_s26 = spop %444 }
  0xe0   : > { %v167_v51 = vstv %s445_s26  ;;  %s172_s28 = scalar_lea.vmem [#allocation1], %s445_s26  ;;  %s178_s29 = scalar_lea.vmem [#allocation8], %s445_s26 }
  0xe1   : > { %v169_v52 = vsel %vm166_vm15, %v167_v51, %v168_v48  ;;  %v174_v53 = vld [vmem:[%s172_s28] ss:$0 sm:$0xff] }
  0xe2   : > { %v180_v54 = vld [vmem:[%s178_s29] ss:$0 sm:$0xff]  ;;  %170 = vst [vmem:[#allocation2] sm:$0x1] %v169_v52  ;;  %175 = vst [vmem:[%s172_s28] sm:$0x1] %v173_v49  ;;  %vm183_vm1 = vcmp.ne.f32.partialorder %v174_v53, 0.0 }
  0xe3   : > { %181 = vst [vmem:[%s178_s29] sm:$0x1] %v179_v50  ;;  %176 = vst [vmem:[%s171_s25] sm:$0x1] %v174_v53  ;;  %v190_v2 = vsel %vm189_vm13, %v174_v53, 0.0 }
  0xe4   : > { %182 = vst [vmem:[%s177_s27] sm:$0x1] %v180_v54  ;;  %vm184_vm3 = vmand %vm166_vm15, %vm183_vm1 }
  0xe5   : > { %v185_v55 = vsel %vm184_vm3, %v174_v53, 1.0 }
  0xe6   : > { %v213_v56 = vsel %vm212_vm14, %v185_v55, 1.0  ;;  %v198_v57 = vsel %vm197_vm2, %v185_v55, 1.0 }
  0xe7   : > { %578 = vrcp.f32 %v213_v56 }
  0xe8   : > { %580 = vrcp.f32 %v198_v57 }
  0xe9   :  { %v276_v12 = vld [vmem:[#allocation2] sm:$0x1] (%p93_p3) }
  0xea   : > { %v209_v59 = vld [vmem:[#allocation1 + $0x8] sm:$0xff]  ;;  %v194_v62 = vld [vmem:[#allocation1] sm:$0xff]  ;;  %278 = vst [vmem:[#allocation3] sm:$0x1] (%p93_p3), %v276_v12 }
  0xeb   :  { %v223_v11 = vld [vmem:[#allocation8] sm:$0xff] (%p93_p3)  ;;  %v225_v13 = vld [vmem:[#allocation8 + $0x8] sm:$0xff] (%p93_p3) }
  0xf1   : > { %v579_v58 = vpop.eup %578 }
  0xf2   : > { %v581_v60 = vpop.eup %580  ;;  %v215_v61 = vmul.f32 %v579_v58, %v209_v59 }
  0xf3   : > { %v200_v63 = vmul.f32 %v581_v60, %v194_v62 }
  0xf4   : > { %v217_v0 = vsel %vm783_vm0, %v215_v61, 0.0 }
  0xf5   : > { %218 = vadd.xlane.f32.xlu1 %v217_v0  ;;  %v202_v1 = vsel %vm201_vm4, %v200_v63, 0.0 }
  0xf6   : > { %203 = vadd.xlane.f32.xlu0 %v202_v1 }
 0x123   :  { %240 = vxpose.xlu0.b32.start [1/2] (short) (narrow) (%p93_p3), %v223_v11, 8 }
 0x127   :  { %241 = vxpose.xlu0.b32.end [2/2] (short) (narrow) (%p93_p3), %v225_v13, 8 }
 0x182   : > { %v219_v4 = vpop.xlane.xlu1 %218  ;;  %95 = sbr.rel (!%p93_p3) target bundleno = 34 (0x22), region = 156 }
 0x183   : > { %v220_v6 = vmul.f32 %v219_v4, %v190_v2  ;;  %v204_v7 = vpop.xlane.xlu0 %203 }
 0x184   : > { %v205_v8 = vmul.f32 %v204_v7, %v190_v2 }
 0x185   : > { %v221_v9 = vsub.f32 %v215_v61, %v220_v6 }
 0x186   : > { %v206_v10 = vsub.f32 %v200_v63, %v205_v8 }
 0x187   : > { %222 = vst [vmem:[#allocation1 + $0x8] sm:$0xff] %v221_v9 }
 0x188   : > { %207 = vst [vmem:[#allocation1] sm:$0xff] %v206_v10 }
 0x1a3   :  { %v256_v14 = vpop.trf.xlu0 }
 0x1a4   :  { %272 = vst [vmem:[#allocation5] sm:$0x1] %v256_v14 }
 0x1ab   :  { %v282_v15 = vld [vmem:[#allocation5] sm:$0x1] }
 0x1ac   :  { %284 = vst [vmem:[#allocation6] sm:$0x1] %v282_v15 }
 0x1ad LB: > { %v332_v16 = vld [vmem:[%s716_s6] sm:$0xff]  ;;  %s334_s6 = scalar_lea.vmem %s716_s6, 8   ;;  %s716_s6 = sphi %s714_s6, %s334_s6   ;;  %s712_s5 = sphi %s710_s5, %s335_s5  }
 0x1ae   : > { %333 = vst [vmem:[%s712_s5] sm:$0xff] %v332_v16  ;;  %s335_s5 = scalar_lea.vmem %s712_s5, 8   ;;  %p329_p4 = scmp.gt.s32.totalorder %s334_s6, [#allocation1 + $0x8] }
 0x1af   :  { %s719_s7 = smov (%p329_p4), [#allocation3]   ;;  %s720_s9 = smov (%p329_p4), [#allocation6]  }
 0x1b0   :  { %331 = sbr.rel (!%p329_p4) target bundleno = 429 (0x1ad), region = 178  ;;  %s352_s8 = sshll.u32 (%p329_p4), %s719_s7, 4  ;;  %s353_s8 = int_to_ptr.vmem [resolvable:$true] %s352_s8 }
 0x1b1   :  { %s361_s10 = sshll.u32 (%p329_p4), %s720_s9, 4  ;;  %s582_s1 = scalar_lea.vmem (%p329_p4), %s353_s8, 16  ;;  %s362_s10 = int_to_ptr.vmem [resolvable:$true] %s361_s10 }
 0x1b2   :  { %p583_p5 = scmp.ne.s32.totalorder (%p329_p4), %s353_s8, %s582_s1  ;;  %s586_s11 = scalar_lea.vmem (%p329_p4), %s353_s8, 32 }
 0x1b3   :  { %p587_p6 = scmp.lt.s32.totalorder (%p329_p4), %s353_s8, %s353_s8  ;;  %p588_p7 = scmp.lt.s32.totalorder (%p329_p4), %s586_s11, %s582_s1 }
 0x1b5   :  { %p589_p8 = por (%p329_p4), %p588_p7, %p587_p6 }
 0x1b7   :  { %p590_p9 = pnand %p589_p8, %p583_p5 }
 0x1b9   :  { %593 = shalt.err (!%p590_p9)
}
 0x1ba   :  { %s594_s14 = scalar_lea.hbm %s836_s2, 16 }
 0x1bb   :  { %p595_p10 = scmp.ne.s32.totalorder %s836_s2, %s594_s14  ;;  %p598_p11 = scmp.lt.u32.totalorder %s594_s14, %s836_s2 }
 0x1bd   :  { %p600_p12 = pnand %p598_p11, %p595_p10 }
 0x1bf   :  { %603 = shalt.err (!%p600_p12)
}
 0x1c0   :  { %355 = dma.vmem_to_hbm [thread:$0]  %s353_s8, 16, %s836_s2, [#allocation4]  }
 0x1c1   :  { %s604_s0 = scalar_lea.vmem %s362_s10, 16  ;;  %s608_s21 = scalar_lea.vmem %s362_s10, 32 }
 0x1c2   :  { %p605_p13 = scmp.ne.s32.totalorder %s362_s10, %s604_s0  ;;  %p609_p0 = scmp.lt.s32.totalorder %s362_s10, %s362_s10 }
 0x1c3   :  { %p610_p1 = scmp.lt.s32.totalorder %s608_s21, %s604_s0 }
 0x1c5   :  { %p611_p2 = por %p610_p1, %p609_p0 }
 0x1c7   :  { %p612_p3 = pnand %p611_p2, %p605_p13 }
 0x1c9   :  { %615 = shalt.err (!%p612_p3)
}
 0x1ca   :  { %s616_s24 = scalar_lea.hbm %s837_s3, 16 }
 0x1cb   :  { %p617_p4 = scmp.ne.s32.totalorder %s837_s3, %s616_s24  ;;  %p620_p5 = scmp.lt.u32.totalorder %s616_s24, %s837_s3 }
 0x1cd   :  { %p622_p6 = pnand %p620_p5, %p617_p4 }
 0x1cf   :  { %625 = shalt.err (!%p622_p6)
}
 0x1d0   :  { %364 = dma.vmem_to_hbm [thread:$0]  %s362_s10, 16, %s837_s3, [#allocation7]  }
 0x1d1   :  { %690 = dma.done.wait [#allocation4], 16  }
 0x1d2   :  { %691 = vsyncadd [#allocation4], 4294967280 }
 0x1d3   :  { %692 = dma.done.wait [#allocation7], 16  }
 0x1d4   :  { %693 = vsyncadd [#allocation7], 4294967280 }
 0x1d5   :  { %371 = vsyncpa [#allocation4], 1 }
 0x1d6   :  { %372 = vsyncpa [#allocation7], 1 }

// kernel: custom-call.14
= control target key start
LH: loop header
LB: loop body
LE: loop exit
PB: predicated region body
PF: predicated region fallthrough
CT: control target
= control target key end

     0   :  { %5 = vsyncpa [#allocation4], 0  ;;  %s877_s0 = inlined_call_operand.vmem [shape: f32[16,16], index: 0, kind: input, shape index: {}]   ;;  %s878_s1 = inlined_call_operand.vmem [shape: f32[16,16], index: 1, kind: output, shape index: {0}]   ;;  %s879_s2 = inlined_call_operand.hbm [shape: s32[16], index: 2, kind: output, shape index: {1}]   ;;  %s880_s3 = inlined_call_operand.vmem [shape: s32[16], index: 3, kind: output, shape index: {2}]  }
   0x1   :  { %s19_s14 = scalar_lea.vmem %s877_s0, 8 }
   0x2   :  { %p454_p0 = scmp.gt.s32.totalorder %s877_s0, %s19_s14 }
   0x3   :  { %s747_s17 = smov (!%p454_p0), [#allocation0]   ;;  %s751_s20 = smov (!%p454_p0), %s877_s0  }
   0x4   :  { %455 = sbr.rel (%p454_p0) target bundleno = 21 (0x15), region = 157 }
   0xb LB: > { %v53_v0 = vld [vmem:[%s753_s20] sm:$0xff]  ;;  %s55_s20 = scalar_lea.vmem %s753_s20, 8   ;;  %s753_s20 = sphi %s751_s20, %s55_s20   ;;  %s749_s17 = sphi %s747_s17, %s56_s17  }
   0xc   : > { %54 = vst [vmem:[%s749_s17] sm:$0xff] %v53_v0  ;;  %s56_s17 = scalar_lea.vmem %s749_s17, 8   ;;  %p50_p1 = scmp.gt.s32.totalorder %s55_s20, %s19_s14 }
   0xe   :  { %52 = sbr.rel (!%p50_p1) target bundleno = 11 (0xb), region = 163 }
  0x15 PF:  { %v68_v1 = vld [vmem:[#allocation0] sm:$0xff]  ;;  %v72_v2 = vld [vmem:[#allocation0 + $0x8] sm:$0xff]  ;;  %v75_v3 = vlaneseq  ;;  %v771_v4 = vmov 0   ;;  %s755_s0 = smov 0  }
  0x16   :  { %69 = vst [vmem:[#allocation1] sm:$0xff] %v68_v1  ;;  %73 = vst [vmem:[#allocation1 + $0x8] sm:$0xff] %v72_v2 }
  0x17   :  { %74 = vst [vmem:[#allocation2] sm:$0x1] %v771_v4  ;;  %v803_v5 = vshrl.u32 %v75_v3, 7 }
  0x18 LB: > { %s512_s21 = sshll.u32 %s757_s0, 3  ;;  %s83_s0 = sadd.s32 1, %s757_s0   ;;  %s757_s0 = sphi %s755_s0, %s83_s0  }
  0x19   : > { %v87_v6 = vstv %s512_s21  ;;  %s85_s22 = scalar_lea.vmem [#allocation7], %s512_s21  ;;  %p80_p2 = scmp.ge.s32.totalorder %s83_s0, 2  }
  0x1a   : > { %v88_v7 = vadd.s32 %v87_v6, %v803_v5  ;;  %s806_s23 = smov (%p80_p2), 0  }
  0x1b   :  { %82 = sbr.rel (!%p80_p2) target bundleno = 24 (0x18), region = 174 }
  0x1c   : > { %89 = vst [vmem:[%s85_s22] sm:$0xff] %v88_v7 }
  0x22 LB: > { %v100_v8 = vld [vmem:[#allocation1] sm:$0xff]  ;;  %v112_v9 = vld [vmem:[#allocation1 + $0x8] sm:$0xff]  ;;  %v812_v10 = vadd.s32 8, %v803_v5  ;;  %v815_v12 = vstv %s761_s23  ;;  %s158_s24 = ssub.s32 128, %s761_s23  ;;  %v164_v45 = vand.u32 127, %v75_v3  ;;  %s170_s25 = scalar_lea.vmem [#allocation1], %s761_s23  ;;  %s761_s23 = sphi %s806_s23, %s95_s23  }
  0x23   : > { %v101_v11 = vand.u32 2147483647, %v100_v8  ;;  %v113_v13 = vand.u32 2147483647, %v112_v9  ;;  %vm104_vm0 = vcmp.ge.s32.totalorder %v803_v5, %v815_v12  ;;  %v167_v48 = vld [vmem:[#allocation2] ss:$0 sm:$0xff] }
  0x24   : > { %vm116_vm3 = vcmp.ge.s32.totalorder %v812_v10, %v815_v12  ;;  %vm188_vm13 = vcmp.gt.s32.totalorder %v164_v45, %v815_v12  ;;  %vm211_vm14 = vcmp.gt.s32.totalorder %v812_v10, %v815_v12  ;;  %vm165_vm15 = vcmp.eq.s32.totalorder %v164_v45, %v815_v12  ;;  %v172_v49 = vld [vmem:[%s170_s25] ss:$0 sm:$0xff]  ;;  %s176_s27 = scalar_lea.vmem [#allocation7], %s761_s23  ;;  %s95_s23 = sadd.s32 1, %s761_s23  }
  0x25   : > { %vm514_vm1 = vcmp.gt.f32.partialorder %v101_v11, -inf  ;;  %v178_v50 = vld [vmem:[%s176_s27] ss:$0 sm:$0xff]  ;;  %p92_p3 = scmp.ge.s32.totalorder %s95_s23, 16  }
  0x26   : > { %vm108_vm2 = vmand %vm104_vm0, %vm514_vm1  ;;  %s763_s5 = smov (%p92_p3), %s878_s1   ;;  %s767_s6 = smov (%p92_p3), [#allocation1]  }
  0x27   : > { %v109_v14 = vsel %vm108_vm2, %v803_v5, %v815_v12  ;;  %v110_v15 = vsel %vm108_vm2, %v101_v11, -inf  ;;  %vm835_vm0 = vmand %vm211_vm14, %vm165_vm15  ;;  %vm196_vm2 = vcmp.gt.s32.totalorder %v803_v5, %v815_v12 }
  0x28   : > { %vm119_vm4 = vcmp.lt.f32.partialorder %v110_v15, %v113_v13 }
  0x29   : > { %vm120_vm5 = vmand %vm116_vm3, %vm119_vm4 }
  0x2a   : > { %v121_v16 = vsel %vm120_vm5, %v812_v10, %v109_v14  ;;  %v122_v17 = vsel %vm120_vm5, %v113_v13, %v110_v15  ;;  %vm200_vm4 = vmand %vm196_vm2, %vm165_vm15 }
  0x2b   : > { %v123_v18 = vrot.slane %v122_v17, 1  ;;  %v124_v19 = vrot.slane %v121_v16, 1 }
  0x2d   : > { %vm125_vm6 = vcmp.ge.f32.partialorder %v123_v18, %v122_v17  ;;  %v128_v20 = vrot.slane %v123_v18, 1  ;;  %v129_v21 = vrot.slane %v124_v19, 1 }
  0x2e   : > { %v126_v22 = vsel %vm125_vm6, %v123_v18, %v122_v17  ;;  %v127_v23 = vsel %vm125_vm6, %v124_v19, %v121_v16 }
  0x2f   : > { %vm130_vm7 = vcmp.ge.f32.partialorder %v128_v20, %v126_v22  ;;  %v133_v24 = vrot.slane %v128_v20, 1  ;;  %v134_v25 = vrot.slane %v129_v21, 1 }
  0x30   : > { %v131_v26 = vsel %vm130_vm7, %v128_v20, %v126_v22  ;;  %v132_v27 = vsel %vm130_vm7, %v129_v21, %v127_v23 }
  0x31   : > { %vm135_vm8 = vcmp.ge.f32.partialorder %v133_v24, %v131_v26  ;;  %v138_v28 = vrot.slane %v133_v24, 1  ;;  %v139_v29 = vrot.slane %v134_v25, 1 }
  0x32   : > { %v136_v30 = vsel %vm135_vm8, %v133_v24, %v131_v26  ;;  %v137_v31 = vsel %vm135_vm8, %v134_v25, %v132_v27 }
  0x33   : > { %vm140_vm9 = vcmp.ge.f32.partialorder %v138_v28, %v136_v30  ;;  %v143_v32 = vrot.slane %v138_v28, 1  ;;  %v144_v33 = vrot.slane %v139_v29, 1 }
  0x34   : > { %v141_v34 = vsel %vm140_vm9, %v138_v28, %v136_v30  ;;  %v142_v35 = vsel %vm140_vm9, %v139_v29, %v137_v31 }
  0x35   : > { %vm145_vm10 = vcmp.ge.f32.partialorder %v143_v32, %v141_v34  ;;  %v148_v36 = vrot.slane %v143_v32, 1  ;;  %v149_v37 = vrot.slane %v144_v33, 1 }
  0x36   : > { %v146_v38 = vsel %vm145_vm10, %v143_v32, %v141_v34  ;;  %v147_v39 = vsel %vm145_vm10, %v144_v33, %v142_v35 }
  0x37   : > { %vm150_vm11 = vcmp.ge.f32.partialorder %v148_v36, %v146_v38  ;;  %v153_v40 = vrot.slane %v148_v36, 1  ;;  %v154_v41 = vrot.slane %v149_v37, 1 }
  0x38   : > { %v151_v42 = vsel %vm150_vm11, %v148_v36, %v146_v38  ;;  %v152_v43 = vsel %vm150_vm11, %v149_v37, %v147_v39 }
  0x39   : > { %vm155_vm12 = vcmp.ge.f32.partialorder %v153_v40, %v151_v42 }
  0x3a   : > { %v157_v44 = vsel %vm155_vm12, %v154_v41, %v152_v43 }
  0x3b   : > { %159 = vrot.lane.b32.xlu0 %v157_v44, %s158_s24 }
  0xad   : > { %v160_v47 = vpop.permute.xlu0 %159 }
  0xae   : > { %522 = vpush %v160_v47 }
  0xdf   : > { %s523_s26 = spop %522 }
  0xe0   : > { %v166_v51 = vstv %s523_s26  ;;  %s171_s28 = scalar_lea.vmem [#allocation1], %s523_s26  ;;  %s177_s29 = scalar_lea.vmem [#allocation7], %s523_s26 }
  0xe1   : > { %v168_v52 = vsel %vm165_vm15, %v166_v51, %v167_v48  ;;  %v173_v53 = vld [vmem:[%s171_s28] ss:$0 sm:$0xff] }
  0xe2   : > { %v179_v54 = vld [vmem:[%s177_s29] ss:$0 sm:$0xff]  ;;  %169 = vst [vmem:[#allocation2] sm:$0x1] %v168_v52  ;;  %174 = vst [vmem:[%s171_s28] sm:$0x1] %v172_v49  ;;  %vm182_vm1 = vcmp.ne.f32.partialorder %v173_v53, 0.0 }
  0xe3   : > { %180 = vst [vmem:[%s177_s29] sm:$0x1] %v178_v50  ;;  %175 = vst [vmem:[%s170_s25] sm:$0x1] %v173_v53  ;;  %v189_v2 = vsel %vm188_vm13, %v173_v53, 0.0 }
  0xe4   : > { %181 = vst [vmem:[%s176_s27] sm:$0x1] %v179_v54  ;;  %vm183_vm3 = vmand %vm165_vm15, %vm182_vm1 }
  0xe5   : > { %v184_v55 = vsel %vm183_vm3, %v173_v53, 1.0 }
  0xe6   : > { %v212_v56 = vsel %vm211_vm14, %v184_v55, 1.0  ;;  %v197_v57 = vsel %vm196_vm2, %v184_v55, 1.0 }
  0xe7   : > { %655 = vrcp.f32 %v212_v56 }
  0xe8   : > { %657 = vrcp.f32 %v197_v57 }
  0xe9   :  { %v275_v12 = vld [vmem:[#allocation2] sm:$0x1] (%p92_p3) }
  0xea   : > { %v208_v59 = vld [vmem:[#allocation1 + $0x8] sm:$0xff]  ;;  %v193_v62 = vld [vmem:[#allocation1] sm:$0xff]  ;;  %277 = vst [vmem:[#allocation3] sm:$0x1] (%p92_p3), %v275_v12 }
  0xeb   :  { %v222_v11 = vld [vmem:[#allocation7] sm:$0xff] (%p92_p3)  ;;  %v224_v13 = vld [vmem:[#allocation7 + $0x8] sm:$0xff] (%p92_p3) }
  0xf1   : > { %v656_v58 = vpop.eup %655 }
  0xf2   : > { %v658_v60 = vpop.eup %657  ;;  %v214_v61 = vmul.f32 %v656_v58, %v208_v59 }
  0xf3   : > { %v199_v63 = vmul.f32 %v658_v60, %v193_v62 }
  0xf4   : > { %v216_v0 = vsel %vm835_vm0, %v214_v61, 0.0 }
  0xf5   : > { %217 = vadd.xlane.f32.xlu1 %v216_v0  ;;  %v201_v1 = vsel %vm200_vm4, %v199_v63, 0.0 }
  0xf6   : > { %202 = vadd.xlane.f32.xlu0 %v201_v1 }
 0x123   :  { %239 = vxpose.xlu0.b32.start [1/2] (short) (narrow) (%p92_p3), %v222_v11, 8 }
 0x127   :  { %240 = vxpose.xlu0.b32.end [2/2] (short) (narrow) (%p92_p3), %v224_v13, 8 }
 0x182   : > { %v218_v4 = vpop.xlane.xlu1 %217  ;;  %94 = sbr.rel (!%p92_p3) target bundleno = 34 (0x22), region = 185 }
 0x183   : > { %v219_v6 = vmul.f32 %v218_v4, %v189_v2  ;;  %v203_v7 = vpop.xlane.xlu0 %202 }
 0x184   : > { %v204_v8 = vmul.f32 %v203_v7, %v189_v2 }
 0x185   : > { %v220_v9 = vsub.f32 %v214_v61, %v219_v6 }
 0x186   : > { %v205_v10 = vsub.f32 %v199_v63, %v204_v8 }
 0x187   : > { %221 = vst [vmem:[#allocation1 + $0x8] sm:$0xff] %v220_v9 }
 0x188   : > { %206 = vst [vmem:[#allocation1] sm:$0xff] %v205_v10 }
 0x1a3   :  { %v255_v14 = vpop.trf.xlu0 }
 0x1a4   :  { %271 = vst [vmem:[#allocation5] sm:$0x1] %v255_v14 }
 0x1ab   :  { %v281_v15 = vld [vmem:[#allocation5] sm:$0x1] }
 0x1ac   :  { %283 = vst [vmem:[#allocation6] sm:$0x1] %v281_v15 }
 0x1ad LB: > { %v331_v16 = vld [vmem:[%s769_s6] sm:$0xff]  ;;  %s333_s6 = scalar_lea.vmem %s769_s6, 8   ;;  %s769_s6 = sphi %s767_s6, %s333_s6   ;;  %s765_s5 = sphi %s763_s5, %s334_s5  }
 0x1ae   : > { %332 = vst [vmem:[%s765_s5] sm:$0xff] %v331_v16  ;;  %s334_s5 = scalar_lea.vmem %s765_s5, 8   ;;  %p328_p4 = scmp.gt.s32.totalorder %s333_s6, [#allocation1 + $0x8] }
 0x1af   :  { %s772_s7 = smov (%p328_p4), [#allocation3]  }
 0x1b0   :  { %330 = sbr.rel (!%p328_p4) target bundleno = 429 (0x1ad), region = 207  ;;  %s351_s8 = sshll.u32 (%p328_p4), %s772_s7, 4  ;;  %s352_s8 = int_to_ptr.vmem [resolvable:$true] %s351_s8 }
 0x1b1   :  { %s659_s1 = scalar_lea.vmem (%p328_p4), %s352_s8, 16  ;;  %s663_s11 = scalar_lea.vmem (%p328_p4), %s352_s8, 32 }
 0x1b2   :  { %p660_p5 = scmp.ne.s32.totalorder (%p328_p4), %s352_s8, %s659_s1  ;;  %p664_p6 = scmp.lt.s32.totalorder (%p328_p4), %s352_s8, %s352_s8 }
 0x1b3   :  { %v417_v3 = vld [vmem:[#allocation6] sm:$0x1] (%p328_p4)  ;;  %p665_p7 = scmp.lt.s32.totalorder (%p328_p4), %s663_s11, %s659_s1 }
 0x1b4   :  { %418 = vst [vmem:[%s880_s3] sm:$0x1] (%p328_p4), %v417_v3 }
 0x1b5   :  { %p666_p8 = por (%p328_p4), %p665_p7, %p664_p6 }
 0x1b7   :  { %p667_p9 = pnand %p666_p8, %p660_p5 }
 0x1b9   :  { %670 = shalt.err (!%p667_p9)
}
 0x1ba   :  { %s671_s14 = scalar_lea.hbm %s879_s2, 16 }
 0x1bb   :  { %p672_p10 = scmp.ne.s32.totalorder %s879_s2, %s671_s14  ;;  %p675_p11 = scmp.lt.u32.totalorder %s671_s14, %s879_s2 }
 0x1bd   :  { %p677_p12 = pnand %p675_p11, %p672_p10 }
 0x1bf   :  { %680 = shalt.err (!%p677_p12)
}
 0x1c0   :  { %354 = dma.vmem_to_hbm [thread:$0]  %s352_s8, 16, %s879_s2, [#allocation4]  }
 0x1c1   :  { %745 = dma.done.wait [#allocation4], 16  }
 0x1c2   :  { %746 = vsyncadd [#allocation4], 4294967280 }
 0x1c3   :  { %424 = vsyncpa [#allocation4], 1 }

// kernel: custom-call.10
= control target key start
LH: loop header
LB: loop body
LE: loop exit
PB: predicated region body
PF: predicated region fallthrough
CT: control target
= control target key end

     0   :  { %v38_v0 = vlaneseq  ;;  %v332_v9 = vmov -1.0   ;;  %v333_v53 = vmov 0.0   ;;  %s401_s0 = inlined_call_operand.vmem [shape: f32[1,16,16], index: 0, kind: input, shape index: {}]   ;;  %s402_s1 = inlined_call_operand.vmem [shape: f32[1,16,16], index: 1, kind: output, shape index: {}]  }
   0x1   :  { %v31_v1 = vld [vmem:[%s401_s0] sm:$0xff]  ;;  %v33_v36 = vld [vmem:[%s401_s0 + $0x8] sm:$0xff] }
   0x2   :  { %v347_v2 = vand.u32 127, %v38_v0  ;;  %v42_v3 = vshrl.u32 %v38_v0, 7 }
   0x4   :  { %vm44_vm0 = vcmp.eq.s32.totalorder %v42_v3, %v347_v2  ;;  %vm40_vm1 = vcmp.lt.s32.totalorder %v347_v2, 16  ;;  %vm49_vm2 = vcmp.ge.s32.totalorder %v42_v3, %v347_v2  ;;  %vm79_vm4 = vcmp.eq.s32.totalorder %v347_v2, 0 }
   0x5   :  { %v46_v4 = vsel %vm44_vm0, %v31_v1, 0.0  ;;  %vm50_vm3 = vmand %vm49_vm2, %vm40_vm1  ;;  %vm76_vm5 = vcmp.eq.s32.totalorder %v347_v2, %v42_v3  ;;  %v80_v10 = vsel %vm79_vm4, 1.0, %v332_v9  ;;  %vm94_vm6 = vcmp.eq.s32.totalorder %v347_v2, 1 }
   0x6   :  { %47 = vadd.xlane.f32.xlu0 %v46_v4  ;;  %v51_v6 = vsel %vm50_vm3, %v31_v1, 0.0  ;;  %v81_v11 = vsel %vm76_vm5, %v80_v10, 0.0  ;;  %vm104_vm7 = vcmp.eq.s32.totalorder %v347_v2, 2  ;;  %vm114_vm8 = vcmp.eq.s32.totalorder %v347_v2, 3 }
   0x7   :  { %vm124_vm9 = vcmp.eq.s32.totalorder %v347_v2, 4  ;;  %v59_v31 = vadd.s32 8, %v42_v3  ;;  %vm134_vm11 = vcmp.eq.s32.totalorder %v347_v2, 5  ;;  %vm144_vm14 = vcmp.eq.s32.totalorder %v347_v2, 6 }
   0x8   :  { %vm154_vm0 = vcmp.eq.s32.totalorder %v347_v2, 7  ;;  %vm178_vm2 = vcmp.eq.s32.totalorder %v347_v2, 9  ;;  %vm192_vm3 = vcmp.eq.s32.totalorder %v347_v2, 10  ;;  %vm206_vm4 = vcmp.eq.s32.totalorder %v347_v2, 11 }
   0x9   :  { %vm60_vm10 = vcmp.eq.s32.totalorder %v59_v31, %v347_v2  ;;  %vm65_vm12 = vcmp.ge.s32.totalorder %v59_v31, %v347_v2  ;;  %vm87_vm15 = vcmp.eq.s32.totalorder %v347_v2, %v59_v31  ;;  %vm220_vm5 = vcmp.eq.s32.totalorder %v347_v2, 12 }
   0xa   :  { %v62_v37 = vsel %vm60_vm10, %v33_v36, 0.0  ;;  %vm66_vm13 = vmand %vm65_vm12, %vm40_vm1  ;;  %v88_v54 = vsel %vm87_vm15, -1.0, %v333_v53  ;;  %vm164_vm1 = vcmp.eq.s32.totalorder %v347_v2, 8 }
   0xb   :  { %v67_v44 = vsel %vm66_vm13, %v33_v36, 0.0 }
  0x93   :  { %v350_v5 = vpop.xlane.xlu0 %47 }
  0x94   :  { %328 = vrcp.f32 %v350_v5  ;;  %vm273_vm10 = vweird.f32 %v350_v5 }
  0x9e   :  { %v357_v7 = vpop.eup %328 }
  0x9f   :  { %v53_v8 = vmul.f32 %v357_v7, %v51_v6 }
  0xa1   :  { %54 = vst [vmem:[#allocation2] sm:$0xff] %v53_v8 }
  0xa8   :  { %v90_v12 = vld [vmem:[#allocation2 + $0x1] ss:$0 sm:$0xff]  ;;  %v100_v15 = vld [vmem:[#allocation2 + $0x2] ss:$0 sm:$0xff]  ;;  %v110_v20 = vld [vmem:[#allocation2 + $0x3] ss:$0 sm:$0xff] }
  0xa9   :  { %v91_v13 = vxor.u32 2147483648, %v90_v12  ;;  %v101_v17 = vxor.u32 2147483648, %v100_v15  ;;  %v111_v22 = vxor.u32 2147483648, %v110_v20  ;;  %v120_v25 = vld [vmem:[#allocation2 + $0x4] ss:$0 sm:$0xff] }
  0xaa   :  { %v121_v27 = vxor.u32 2147483648, %v120_v25  ;;  %v130_v30 = vld [vmem:[#allocation2 + $0x5] ss:$0 sm:$0xff]  ;;  %v140_v38 = vld [vmem:[#allocation2 + $0x6] ss:$0 sm:$0xff] }
  0xab   :  { %v95_v14 = vmul.f32 %v91_v13, %v81_v11  ;;  %v131_v33 = vxor.u32 2147483648, %v130_v30  ;;  %v141_v40 = vxor.u32 2147483648, %v140_v38  ;;  %v150_v47 = vld [vmem:[#allocation2 + $0x7] ss:$0 sm:$0xff] }
  0xac   :  { %v151_v50 = vxor.u32 2147483648, %v150_v47 }
  0xad   :  { %96 = vadd.xlane.f32.xlu0 %v95_v14 }
 0x13a   :  { %v97_v16 = vpop.xlane.xlu0 %96 }
 0x13b   :  { %v98_v18 = vsel %vm94_vm6, %v97_v16, %v81_v11  ;;  %vm234_vm6 = vcmp.eq.s32.totalorder %v347_v2, 13 }
 0x13c   :  { %v105_v19 = vmul.f32 %v101_v17, %v98_v18 }
 0x13e   :  { %106 = vadd.xlane.f32.xlu1 %v105_v19 }
 0x1cb   :  { %v107_v21 = vpop.xlane.xlu1 %106 }
 0x1cc   :  { %v108_v23 = vsel %vm104_vm7, %v107_v21, %v98_v18  ;;  %vm248_vm7 = vcmp.eq.s32.totalorder %v347_v2, 14 }
 0x1cd   :  { %v115_v24 = vmul.f32 %v111_v22, %v108_v23 }
 0x1cf   :  { %116 = vadd.xlane.f32.xlu1 %v115_v24 }
 0x25c   :  { %v117_v26 = vpop.xlane.xlu1 %116 }
 0x25d   :  { %v118_v28 = vsel %vm114_vm8, %v117_v26, %v108_v23  ;;  %vm262_vm8 = vcmp.eq.s32.totalorder %v347_v2, 15 }
 0x25e   :  { %v125_v29 = vmul.f32 %v121_v27, %v118_v28 }
 0x260   :  { %126 = vadd.xlane.f32.xlu0 %v125_v29 }
 0x2ed   :  { %v127_v32 = vpop.xlane.xlu0 %126 }
 0x2ee   :  { %v128_v34 = vsel %vm124_vm9, %v127_v32, %v118_v28 }
 0x2ef   :  { %v135_v35 = vmul.f32 %v131_v33, %v128_v34 }
 0x2f1   :  { %136 = vadd.xlane.f32.xlu1 %v135_v35 }
 0x2f5   :  { %63 = vadd.xlane.f32.xlu1 %v62_v37 }
 0x37e   :  { %v137_v39 = vpop.xlane.xlu1 %136 }
 0x37f   :  { %v138_v41 = vsel %vm134_vm11, %v137_v39, %v128_v34 }
 0x380   :  { %v145_v42 = vmul.f32 %v141_v40, %v138_v41 }
 0x382   :  { %146 = vadd.xlane.f32.xlu0 %v145_v42  ;;  %v371_v43 = vpop.xlane.xlu1 %63 }
 0x383   :  { %330 = vrcp.f32 %v371_v43  ;;  %vm278_vm9 = vweird.f32 %v371_v43 }
 0x38d   :  { %v377_v45 = vpop.eup %330 }
 0x38e   :  { %v69_v46 = vmul.f32 %v377_v45, %v67_v44 }
 0x390   :  { %70 = vst [vmem:[#allocation2 + $0x8] sm:$0xff] %v69_v46 }
 0x397   :  { %v160_v48 = vld [vmem:[#allocation2 + $0x8] ss:$0 sm:$0xff]  ;;  %v174_v59 = vld [vmem:[#allocation2 + $0x9] ss:$0 sm:$0xff]  ;;  %v188_v4 = vld [vmem:[#allocation2 + $0xa] ss:$0 sm:$0xff] }
 0x398   :  { %v161_v51 = vxor.u32 2147483648, %v160_v48  ;;  %v175_v62 = vxor.u32 2147483648, %v174_v59  ;;  %v189_v9 = vxor.u32 2147483648, %v188_v4  ;;  %v202_v14 = vld [vmem:[#allocation2 + $0xb] ss:$0 sm:$0xff] }
 0x399   :  { %v203_v17 = vxor.u32 2147483648, %v202_v14  ;;  %v216_v22 = vld [vmem:[#allocation2 + $0xc] ss:$0 sm:$0xff]  ;;  %v230_v30 = vld [vmem:[#allocation2 + $0xd] ss:$0 sm:$0xff] }
 0x39a   :  { %v169_v56 = vmul.f32 %v161_v51, %v88_v54  ;;  %v217_v25 = vxor.u32 2147483648, %v216_v22  ;;  %v231_v33 = vxor.u32 2147483648, %v230_v30  ;;  %v244_v38 = vld [vmem:[#allocation2 + $0xe] ss:$0 sm:$0xff]  ;;  %v258_v48 = vld [vmem:[#allocation2 + $0xf] ss:$0 sm:$0xff] }
 0x40f   :  { %v147_v49 = vpop.xlane.xlu0 %146 }
 0x410   :  { %v148_v52 = vsel %vm144_vm14, %v147_v49, %v138_v41  ;;  %v245_v41 = vxor.u32 2147483648, %v244_v38 }
 0x411   :  { %v155_v55 = vmul.f32 %v151_v50, %v148_v52 }
 0x413   :  { %156 = vadd.xlane.f32.xlu0 %v155_v55 }
 0x417   :  { %170 = vadd.xlane.f32.xlu0 %v169_v56 }
 0x4a0   :  { %v157_v57 = vpop.xlane.xlu0 %156 }
 0x4a1   :  { %v158_v58 = vsel %vm154_vm0, %v157_v57, %v148_v52 }
 0x4a2   :  { %v165_v60 = vmul.f32 %v161_v51, %v158_v58  ;;  %v259_v51 = vxor.u32 2147483648, %v258_v48 }
 0x4a4   :  { %v171_v61 = vpop.xlane.xlu0 %170  ;;  %166 = vadd.xlane.f32.xlu1 %v165_v60 }
 0x4a5   :  { %v172_v63 = vsel %vm164_vm1, %v171_v61, %v88_v54 }
 0x4a6   :  { %v183_v0 = vmul.f32 %v175_v62, %v172_v63 }
 0x4a8   :  { %184 = vadd.xlane.f32.xlu0 %v183_v0 }
 0x531   :  { %v167_v1 = vpop.xlane.xlu1 %166 }
 0x532   :  { %v168_v3 = vsel %vm164_vm1, %v167_v1, %v158_v58 }
 0x533   :  { %v179_v6 = vmul.f32 %v175_v62, %v168_v3 }
 0x535   :  { %v185_v8 = vpop.xlane.xlu0 %184  ;;  %180 = vadd.xlane.f32.xlu1 %v179_v6 }
 0x536   :  { %v186_v10 = vsel %vm178_vm2, %v185_v8, %v172_v63 }
 0x537   :  { %v197_v11 = vmul.f32 %v189_v9, %v186_v10 }
 0x539   :  { %198 = vadd.xlane.f32.xlu0 %v197_v11 }
 0x5c2   :  { %v181_v12 = vpop.xlane.xlu1 %180 }
 0x5c3   :  { %v182_v13 = vsel %vm178_vm2, %v181_v12, %v168_v3 }
 0x5c4   :  { %v193_v15 = vmul.f32 %v189_v9, %v182_v13 }
 0x5c6   :  { %v199_v16 = vpop.xlane.xlu0 %198  ;;  %194 = vadd.xlane.f32.xlu1 %v193_v15 }
 0x5c7   :  { %v200_v18 = vsel %vm192_vm3, %v199_v16, %v186_v10 }
 0x5c8   :  { %v211_v19 = vmul.f32 %v203_v17, %v200_v18 }
 0x5ca   :  { %212 = vadd.xlane.f32.xlu0 %v211_v19 }
 0x653   :  { %v195_v20 = vpop.xlane.xlu1 %194 }
 0x654   :  { %v196_v21 = vsel %vm192_vm3, %v195_v20, %v182_v13 }
 0x655   :  { %v207_v23 = vmul.f32 %v203_v17, %v196_v21 }
 0x657   :  { %v213_v24 = vpop.xlane.xlu0 %212  ;;  %208 = vadd.xlane.f32.xlu1 %v207_v23 }
 0x658   :  { %v214_v26 = vsel %vm206_vm4, %v213_v24, %v200_v18 }
 0x659   :  { %v225_v27 = vmul.f32 %v217_v25, %v214_v26 }
 0x65b   :  { %226 = vadd.xlane.f32.xlu0 %v225_v27 }
 0x6e4   :  { %v209_v28 = vpop.xlane.xlu1 %208 }
 0x6e5   :  { %v210_v29 = vsel %vm206_vm4, %v209_v28, %v196_v21 }
 0x6e6   :  { %v221_v31 = vmul.f32 %v217_v25, %v210_v29 }
 0x6e8   :  { %v227_v32 = vpop.xlane.xlu0 %226  ;;  %222 = vadd.xlane.f32.xlu1 %v221_v31 }
 0x6e9   :  { %v228_v34 = vsel %vm220_vm5, %v227_v32, %v214_v26 }
 0x6ea   :  { %v239_v35 = vmul.f32 %v231_v33, %v228_v34 }
 0x6ec   :  { %240 = vadd.xlane.f32.xlu0 %v239_v35 }
 0x775   :  { %v223_v36 = vpop.xlane.xlu1 %222 }
 0x776   :  { %v224_v37 = vsel %vm220_vm5, %v223_v36, %v210_v29 }
 0x777   :  { %v235_v39 = vmul.f32 %v231_v33, %v224_v37 }
 0x779   :  { %v241_v40 = vpop.xlane.xlu0 %240  ;;  %236 = vadd.xlane.f32.xlu1 %v235_v39 }
 0x77a   :  { %v242_v42 = vsel %vm234_vm6, %v241_v40, %v228_v34 }
 0x77b   :  { %v253_v44 = vmul.f32 %v245_v41, %v242_v42 }
 0x77d   :  { %254 = vadd.xlane.f32.xlu0 %v253_v44 }
 0x806   :  { %v237_v46 = vpop.xlane.xlu1 %236 }
 0x807   :  { %v238_v47 = vsel %vm234_vm6, %v237_v46, %v224_v37 }
 0x808   :  { %v249_v49 = vmul.f32 %v245_v41, %v238_v47 }
 0x80a   :  { %v255_v50 = vpop.xlane.xlu0 %254  ;;  %250 = vadd.xlane.f32.xlu1 %v249_v49 }
 0x80b   :  { %v256_v52 = vsel %vm248_vm7, %v255_v50, %v242_v42 }
 0x80c   :  { %v267_v53 = vmul.f32 %v259_v51, %v256_v52 }
 0x80e   :  { %268 = vadd.xlane.f32.xlu0 %v267_v53 }
 0x897   :  { %v251_v54 = vpop.xlane.xlu1 %250 }
 0x898   :  { %v252_v55 = vsel %vm248_vm7, %v251_v54, %v238_v47 }
 0x899   :  { %v263_v56 = vmul.f32 %v259_v51, %v252_v55 }
 0x89b   :  { %v269_v57 = vpop.xlane.xlu0 %268  ;;  %264 = vadd.xlane.f32.xlu1 %v263_v56 }
 0x89c   :  { %v270_v58 = vsel %vm262_vm8, %v269_v57, %v256_v52 }
 0x89d   :  { %v277_v59 = vmul.f32 %v377_v45, %v270_v58 }
 0x89f   :  { %v279_v60 = vsel %vm278_vm9, %v270_v58, %v277_v59 }
 0x8a0   :  { %314 = vst [vmem:[%s402_s1 + $0x8] sm:$0xff] %v279_v60 }
 0x928   :  { %v265_v61 = vpop.xlane.xlu1 %264 }
 0x929   :  { %v266_v62 = vsel %vm262_vm8, %v265_v61, %v252_v55 }
 0x92a   :  { %v272_v63 = vmul.f32 %v357_v7, %v266_v62 }
 0x92c   :  { %v274_v2 = vsel %vm273_vm10, %v266_v62, %v272_v63 }
 0x92d   :  { %312 = vst [vmem:[%s402_s1] sm:$0xff] %v274_v2 }

// kernel: golem_forward.1
= control target key start
LH: loop header
LB: loop body
LE: loop exit
PB: predicated region body
PF: predicated region fallthrough
CT: control target
= control target key end

     0   :  { %v964_v1 = vmov 0.0|0.0   ;;  %vm54_vm0 = vcmask 130048   ;;  %v965_v41 = vmov 0.0   ;;  %s1399_s0 = inlined_call_operand.vmem [shape: f32[500,16], index: 0, kind: input, shape index: {}]   ;;  %s1400_s1 = inlined_call_operand.vmem [shape: f32[1,16,16], index: 1, kind: output, shape index: {}]  }
   0x1   :  { %v979_v0 = vld [vmem:[%s1399_s0 + $0x180] sm:$0xff]  ;;  %875 = vmatprep.subr.bf16.mxu1 %v964_v1  ;;  %v986_v2 = vld [vmem:[%s1399_s0 + $0x188] sm:$0xff]  ;;  %v1001_v6 = vld [vmem:[%s1399_s0 + $0x190] sm:$0xff]  ;;  %55 = vst.msk [vmem:[%s1400_s1] sm:$0xff] %vm54_vm0, %v965_v41 }
   0x2   :  { %607 = vxpose.xlu1.b32.start [1/15] (short) (narrow) %v979_v0, 16  ;;  %v57_v3 = vld [vmem:[%s1399_s0] sm:$0xff]  ;;  %v58_v5 = vld [vmem:[%s1399_s0 + $0x8] sm:$0xff]  ;;  %v59_v14 = vld [vmem:[%s1399_s0 + $0x10] sm:$0xff]  ;;  %56 = vst.msk [vmem:[%s1400_s1 + $0x8] sm:$0xff] %vm54_vm0, %v965_v41 }
   0x3   :  { %v73_v4 = vld [vmem:[%s1399_s0 + $0x80] sm:$0xff]  ;;  %v74_v8 = vld [vmem:[%s1399_s0 + $0x88] sm:$0xff]  ;;  %v845_v9 = vpack.c.bf16 %v58_v5, %v57_v3  ;;  %v75_v15 = vld [vmem:[%s1399_s0 + $0x90] sm:$0xff] }
   0x4   :  { %v922_v7 = vpack.i.bf16 %v57_v3, %v73_v4  ;;  %v1009_v10 = vld [vmem:[%s1399_s0 + $0x100] sm:$0xff]  ;;  %v1014_v11 = vld [vmem:[%s1399_s0 + $0x108] sm:$0xff]  ;;  %v843_v12 = vpack.c.bf16 %v74_v8, %v73_v4  ;;  %v924_v13 = vpack.i.bf16 %v58_v5, %v74_v8  ;;  %v76_v16 = vld [vmem:[%s1399_s0 + $0x98] sm:$0xff]  ;;  %v926_v28 = vpack.i.bf16 %v59_v14, %v75_v15 }
   0x5   :  { %v876_v17 = vpack.c.bf16 %v1014_v11, %v1009_v10  ;;  %v60_v18 = vld [vmem:[%s1399_s0 + $0x18] sm:$0xff]  ;;  %v847_v19 = vpack.c.bf16 %v76_v16, %v75_v15  ;;  %v1034_v20 = vld [vmem:[%s1399_s0 + $0x110] sm:$0xff]  ;;  %v1049_v24 = vld [vmem:[%s1399_s0 + $0xa0] sm:$0xff] }
   0x6   :  { %608 = vxpose.xlu1.b32.cont [2/15] (short) (narrow) %v986_v2, 16  ;;  %923 = vxpose.xlu0.b32.start [1/16] (narrow) %v922_v7, 16  ;;  %v1039_v21 = vld [vmem:[%s1399_s0 + $0x118] sm:$0xff]  ;;  %v849_v23 = vpack.c.bf16 %v60_v18, %v59_v14  ;;  %v1056_v26 = vld [vmem:[%s1399_s0 + $0xa8] sm:$0xff]  ;;  %v61_v29 = vld [vmem:[%s1399_s0 + $0x20] sm:$0xff]  ;;  %v928_v39 = vpack.i.bf16 %v60_v18, %v76_v16 }
   0x7   :  { %844 = vmatprep.subr.bf16.mxu0 %v843_v12  ;;  %v1044_v22 = vld [vmem:[%s1399_s0 + $0x198] sm:$0xff]  ;;  %v879_v25 = vpack.c.bf16 %v1039_v21, %v1034_v20  ;;  %877 = vmatpush1.bf16.msra.mxu1 %v876_v17  ;;  %v851_v27 = vpack.c.bf16 %v1056_v26, %v1049_v24  ;;  %v1068_v30 = vld [vmem:[%s1399_s0 + $0x28] sm:$0xff]  ;;  %v1073_v31 = vld [vmem:[%s1399_s0 + $0x120] sm:$0xff]  ;;  %v930_v51 = vpack.i.bf16 %v61_v29, %v1049_v24 }
   0x8   :  { %846 = vmatpush3.bf16.msra.mxu0 %v845_v9  ;;  %878 = vmatprep.subr.bf16.mxu1 %v964_v1  ;;  %v1078_v32 = vld [vmem:[%s1399_s0 + $0x128] sm:$0xff]  ;;  %v1083_v33 = vld [vmem:[%s1399_s0 + $0x1a0] sm:$0xff]  ;;  %v853_v34 = vpack.c.bf16 %v1068_v30, %v61_v29  ;;  %v1089_v35 = vld [vmem:[%s1399_s0 + $0xb0] sm:$0xff]  ;;  %v932_v62 = vpack.i.bf16 %v1068_v30, %v1056_v26 }
   0x9   :  { %848 = vmatprep.subr.bf16.mxu0 %v847_v19  ;;  %v882_v36 = vpack.c.bf16 %v1078_v32, %v1073_v31  ;;  %v1096_v37 = vld [vmem:[%s1399_s0 + $0xb8] sm:$0xff]  ;;  %v1104_v40 = vld [vmem:[%s1399_s0 + $0x30] sm:$0xff]  ;;  %v1135_v45 = vld [vmem:[%s1399_s0 + $0x1a8] sm:$0xff] }
   0xa   :  { %609 = vxpose.xlu1.b32.cont [3/15] (short) (narrow) %v1001_v6, 16  ;;  %925 = vxpose.xlu0.b32.cont [2/16] (narrow) %v924_v13, 16  ;;  %v855_v38 = vpack.c.bf16 %v1096_v37, %v1089_v35  ;;  %v1120_v42 = vld [vmem:[%s1399_s0 + $0x38] sm:$0xff]  ;;  %v1125_v43 = vld [vmem:[%s1399_s0 + $0x130] sm:$0xff]  ;;  %v1142_v47 = vld [vmem:[%s1399_s0 + $0xc0] sm:$0xff]  ;;  %v934_v15 = vpack.i.bf16 %v1104_v40, %v1089_v35 }
   0xb   :  { %880 = vmatpush1.bf16.msra.mxu1 %v879_v25  ;;  %v1130_v44 = vld [vmem:[%s1399_s0 + $0x138] sm:$0xff]  ;;  %v857_v46 = vpack.c.bf16 %v1120_v42, %v1104_v40  ;;  %v1149_v49 = vld [vmem:[%s1399_s0 + $0xc8] sm:$0xff]  ;;  %v1158_v52 = vld [vmem:[%s1399_s0 + $0x40] sm:$0xff]  ;;  %v936_v29 = vpack.i.bf16 %v1120_v42, %v1096_v37  ;;  %v900_v42 = vpack.c.bf16 %v986_v2, %v979_v0 }
   0xc   :  { %850 = vmatpush3.bf16.msra.mxu0 %v849_v23  ;;  %881 = vmatprep.subr.bf16.mxu1 %v964_v1  ;;  %v885_v48 = vpack.c.bf16 %v1130_v44, %v1125_v43  ;;  %v859_v50 = vpack.c.bf16 %v1149_v49, %v1142_v47  ;;  %v1164_v53 = vld [vmem:[%s1399_s0 + $0x48] sm:$0xff]  ;;  %v1169_v54 = vld [vmem:[%s1399_s0 + $0x140] sm:$0xff]  ;;  %v1179_v56 = vld [vmem:[%s1399_s0 + $0x1b0] sm:$0xff]  ;;  %v938_v40 = vpack.i.bf16 %v1158_v52, %v1142_v47 }
   0xd   :  { %852 = vmatprep.subr.bf16.mxu0 %v851_v27  ;;  %v1174_v55 = vld [vmem:[%s1399_s0 + $0x148] sm:$0xff]  ;;  %v861_v57 = vpack.c.bf16 %v1164_v53, %v1158_v52  ;;  %v1186_v58 = vld [vmem:[%s1399_s0 + $0xd0] sm:$0xff]  ;;  %v1193_v60 = vld [vmem:[%s1399_s0 + $0xd8] sm:$0xff]  ;;  %v903_v47 = vpack.c.bf16 %v1044_v22, %v1001_v6 }
   0xe   :  { %610 = vxpose.xlu1.b32.cont [4/15] (short) (narrow) %v1044_v22, 16  ;;  %927 = vxpose.xlu0.b32.cont [3/16] (narrow) %v926_v28, 16  ;;  %v888_v59 = vpack.c.bf16 %v1174_v55, %v1169_v54  ;;  %v863_v61 = vpack.c.bf16 %v1193_v60, %v1186_v58  ;;  %v1203_v63 = vld [vmem:[%s1399_s0 + $0x50] sm:$0xff]  ;;  %v1209_v3 = vld [vmem:[%s1399_s0 + $0x58] sm:$0xff]  ;;  %v1231_v9 = vld [vmem:[%s1399_s0 + $0xe0] sm:$0xff] }
   0xf   :  { %883 = vmatpush1.bf16.msra.mxu1 %v882_v36  ;;  %v1214_v4 = vld [vmem:[%s1399_s0 + $0x150] sm:$0xff]  ;;  %v1219_v5 = vld [vmem:[%s1399_s0 + $0x158] sm:$0xff]  ;;  %v865_v8 = vpack.c.bf16 %v1209_v3, %v1203_v63  ;;  %v1238_v13 = vld [vmem:[%s1399_s0 + $0xe8] sm:$0xff]  ;;  %v944_v52 = vpack.i.bf16 %v1209_v3, %v1193_v60 }
  0x10   :  { %854 = vmatpush3.bf16.msra.mxu0 %v853_v34  ;;  %884 = vmatprep.subr.bf16.mxu1 %v964_v1  ;;  %v1224_v7 = vld [vmem:[%s1399_s0 + $0x1b8] sm:$0xff]  ;;  %v891_v12 = vpack.c.bf16 %v1219_v5, %v1214_v4  ;;  %v867_v14 = vpack.c.bf16 %v1238_v13, %v1231_v9  ;;  %v1248_v16 = vld [vmem:[%s1399_s0 + $0x60] sm:$0xff]  ;;  %v1254_v17 = vld [vmem:[%s1399_s0 + $0x68] sm:$0xff] }
  0x11   :  { %856 = vmatprep.subr.bf16.mxu0 %v855_v38  ;;  %v1259_v18 = vld [vmem:[%s1399_s0 + $0x160] sm:$0xff]  ;;  %v1264_v19 = vld [vmem:[%s1399_s0 + $0x168] sm:$0xff]  ;;  %v869_v24 = vpack.c.bf16 %v1254_v17, %v1248_v16  ;;  %v1276_v25 = vld [vmem:[%s1399_s0 + $0xf0] sm:$0xff] }
  0x12   :  { %611 = vxpose.xlu1.b32.cont [5/15] (short) (narrow) %v1083_v33, 16  ;;  %929 = vxpose.xlu0.b32.cont [4/16] (narrow) %v928_v39, 16  ;;  %v1269_v23 = vld [vmem:[%s1399_s0 + $0x1c0] sm:$0xff]  ;;  %v894_v26 = vpack.c.bf16 %v1264_v19, %v1259_v18  ;;  %v1283_v27 = vld [vmem:[%s1399_s0 + $0xf8] sm:$0xff]  ;;  %v1293_v30 = vld [vmem:[%s1399_s0 + $0x70] sm:$0xff] }
  0x13   :  { %886 = vmatpush1.bf16.msra.mxu1 %v885_v48  ;;  %v871_v28 = vpack.c.bf16 %v1283_v27, %v1276_v25  ;;  %v1299_v34 = vld [vmem:[%s1399_s0 + $0x78] sm:$0xff]  ;;  %v1304_v35 = vld [vmem:[%s1399_s0 + $0x170] sm:$0xff]  ;;  %v114_v37 = vld [vmem:[%s1399_s0 + $0x1c8] sm:$0xff]  ;;  %v123_v48 = vlaneseq }
  0x14   :  { %858 = vmatpush3.bf16.msra.mxu0 %v857_v46  ;;  %887 = vmatprep.subr.bf16.mxu1 %v964_v1  ;;  %v1309_v36 = vld [vmem:[%s1399_s0 + $0x178] sm:$0xff]  ;;  %v873_v38 = vpack.c.bf16 %v1299_v34, %v1293_v30  ;;  %v115_v46 = vld [vmem:[%s1399_s0 + $0x1d0] sm:$0xff]  ;;  %v117_v6 = vld [vmem:[%s1399_s0 + $0x1e0] sm:$0xff] }
  0x15   :  { %860 = vmatprep.subr.bf16.mxu0 %v859_v50  ;;  %v897_v39 = vpack.c.bf16 %v1309_v36, %v1304_v35  ;;  %v940_v50 = vpack.i.bf16 %v1164_v53, %v1149_v49  ;;  %v116_v0 = vld [vmem:[%s1399_s0 + $0x1d8] sm:$0xff]  ;;  %v124_v2 = vshrl.u32 %v123_v48, 7  ;;  %v906_v49 = vpack.c.bf16 %v1135_v45, %v1083_v33  ;;  %v118_v33 = vld [vmem:[%s1399_s0 + $0x1e8] sm:$0xff] }
  0x16   :  { %612 = vxpose.xlu1.b32.cont [6/15] (short) (narrow) %v1135_v45, 16  ;;  %931 = vxpose.xlu0.b32.cont [5/16] (narrow) %v930_v51, 16  ;;  %v942_v51 = vpack.i.bf16 %v1203_v63, %v1186_v58  ;;  %v909_v53 = vpack.c.bf16 %v1224_v7, %v1179_v56  ;;  %v119_v45 = vld [vmem:[%s1399_s0 + $0x1f0] sm:$0xff]  ;;  %v912_v58 = vpack.c.bf16 %v114_v37, %v1269_v23 }
  0x17   :  { %889 = vmatpush1.bf16.msra.mxu1 %v888_v59  ;;  %v186_v22 = vadd.s32 496, %v124_v2  ;;  %v948_v59 = vpack.i.bf16 %v1254_v17, %v1238_v13  ;;  %v915_v60 = vpack.c.bf16 %v116_v0, %v115_v46  ;;  %v952_v63 = vpack.i.bf16 %v1299_v34, %v1283_v27 }
  0x18   :  { %862 = vmatpush3.bf16.msra.mxu0 %v861_v57  ;;  %890 = vmatprep.subr.bf16.mxu1 %v964_v1  ;;  %v946_v57 = vpack.i.bf16 %v1248_v16, %v1231_v9 }
  0x19   :  { %864 = vmatprep.subr.bf16.mxu0 %v863_v61  ;;  %vm315_vm1 = vcmp.lt.s32.totalorder %v186_v22, 500  ;;  %v950_v61 = vpack.i.bf16 %v1293_v30, %v1276_v25 }
  0x1a   :  { %613 = vxpose.xlu1.b32.cont [7/15] (short) (narrow) %v1179_v56, 16  ;;  %933 = vxpose.xlu0.b32.cont [6/16] (narrow) %v932_v62, 16  ;;  %v507_v56 = vsel %vm315_vm1, %v119_v45, 0.0  ;;  %v918_v62 = vpack.c.bf16 %v118_v33, %v117_v6 }
  0x1b   :  { %892 = vmatpush1.bf16.msra.mxu1 %v891_v12 }
  0x1c   :  { %866 = vmatpush3.bf16.msra.mxu0 %v865_v8  ;;  %893 = vmatprep.subr.bf16.mxu1 %v964_v1  ;;  %v509_v8 = vld [vmem:[%s1400_s1] sm:$0xff] }
  0x1d   :  { %868 = vmatprep.subr.bf16.mxu0 %v867_v14 }
  0x1e   :  { %614 = vxpose.xlu1.b32.cont [8/15] (short) (narrow) %v1224_v7, 16  ;;  %935 = vxpose.xlu0.b32.cont [7/16] (narrow) %v934_v15, 16  ;;  %v510_v15 = vld [vmem:[%s1400_s1 + $0x8] sm:$0xff] }
  0x1f   :  { %895 = vmatpush1.bf16.msra.mxu1 %v894_v26 }
  0x20   :  { %870 = vmatpush3.bf16.msra.mxu0 %v869_v24  ;;  %896 = vmatprep.subr.bf16.mxu1 %v964_v1 }
  0x21   :  { %872 = vmatprep.subr.bf16.mxu0 %v871_v28 }
  0x22   :  { %615 = vxpose.xlu1.b32.cont [9/15] (short) (narrow) %v1269_v23, 16  ;;  %937 = vxpose.xlu0.b32.cont [8/16] (narrow) %v936_v29, 16 }
  0x23   :  { %898 = vmatpush1.bf16.msra.mxu1 %v897_v39 }
  0x24   :  { %874 = vmatpush3.bf16.msra.mxu0 %v873_v38  ;;  %899 = vmatprep.subr.bf16.mxu1 %v964_v1 }
  0x26   :  { %616 = vxpose.xlu1.b32.cont [10/15] (short) (narrow) %v114_v37, 16  ;;  %939 = vxpose.xlu0.b32.cont [9/16] (narrow) %v938_v40, 16 }
  0x27   :  { %901 = vmatpush1.bf16.msra.mxu1 %v900_v42 }
  0x28   :  { %902 = vmatprep.subr.bf16.mxu1 %v964_v1 }
  0x2a   :  { %617 = vxpose.xlu1.b32.cont [11/15] (short) (narrow) %v115_v46, 16  ;;  %941 = vxpose.xlu0.b32.cont [10/16] (narrow) %v940_v50, 16 }
  0x2b   :  { %904 = vmatpush1.bf16.msra.mxu1 %v903_v47 }
  0x2c   :  { %905 = vmatprep.subr.bf16.mxu1 %v964_v1 }
  0x2e   :  { %618 = vxpose.xlu1.b32.cont [12/15] (short) (narrow) %v116_v0, 16  ;;  %943 = vxpose.xlu0.b32.cont [11/16] (narrow) %v942_v51, 16 }
  0x2f   :  { %907 = vmatpush1.bf16.msra.mxu1 %v906_v49 }
  0x30   :  { %908 = vmatprep.subr.bf16.mxu1 %v964_v1 }
  0x32   :  { %619 = vxpose.xlu1.b32.cont [13/15] (short) (narrow) %v117_v6, 16  ;;  %945 = vxpose.xlu0.b32.cont [12/16] (narrow) %v944_v52, 16 }
  0x33   :  { %910 = vmatpush1.bf16.msra.mxu1 %v909_v53 }
  0x34   :  { %911 = vmatprep.subr.bf16.mxu1 %v964_v1 }
  0x36   :  { %620 = vxpose.xlu1.b32.cont [14/15] (short) (narrow) %v118_v33, 16  ;;  %947 = vxpose.xlu0.b32.cont [13/16] (narrow) %v946_v57, 16 }
  0x37   :  { %913 = vmatpush1.bf16.msra.mxu1 %v912_v58 }
  0x38   :  { %914 = vmatprep.subr.bf16.mxu1 %v964_v1 }
  0x3a   :  { %621 = vxpose.xlu1.b32.end [15/15] (short) (narrow) %v507_v56, 16  ;;  %949 = vxpose.xlu0.b32.cont [14/16] (narrow) %v948_v59, 16 }
  0x3b   :  { %916 = vmatpush1.bf16.msra.mxu1 %v915_v60 }
  0x3c   :  { %917 = vmatprep.subr.bf16.mxu1 %v964_v1 }
  0x3e   :  { %575 = vxpose.xlu1.b32.start [1/16] (narrow) %v1009_v10, 16  ;;  %951 = vxpose.xlu0.b32.cont [15/16] (narrow) %v950_v61, 16 }
  0x3f   :  { %919 = vmatpush1.bf16.msra.mxu1 %v918_v62 }
  0x40   :  { %774 = vmatprep.subr.mxu1 %v965_v41 }
  0x42   :  { %576 = vxpose.xlu1.b32.cont [2/16] (narrow) %v1014_v11, 16  ;;  %953 = vxpose.xlu0.b32.end [16/16] (narrow) %v952_v63, 16 }
  0x43   :  { %804 = vmatpush1.msk.msra.mxu1 %vm315_vm1, %v119_v45 }
  0x46   :  { %577 = vxpose.xlu1.b32.cont [3/16] (narrow) %v1034_v20, 16 }
  0x4a   :  { %578 = vxpose.xlu1.b32.cont [4/16] (narrow) %v1039_v21, 16 }
  0x4e   :  { %579 = vxpose.xlu1.b32.cont [5/16] (narrow) %v1073_v31, 16 }
  0x52   :  { %580 = vxpose.xlu1.b32.cont [6/16] (narrow) %v1078_v32, 16 }
  0x56   :  { %581 = vxpose.xlu1.b32.cont [7/16] (narrow) %v1125_v43, 16 }
  0x5a   :  { %582 = vxpose.xlu1.b32.cont [8/16] (narrow) %v1130_v44, 16 }
  0x5e   :  { %583 = vxpose.xlu1.b32.cont [9/16] (narrow) %v1169_v54, 16 }
  0x62   :  { %584 = vxpose.xlu1.b32.cont [10/16] (narrow) %v1174_v55, 16 }
  0x66   :  { %585 = vxpose.xlu1.b32.cont [11/16] (narrow) %v1214_v4, 16 }
  0x6a   :  { %586 = vxpose.xlu1.b32.cont [12/16] (narrow) %v1219_v5, 16 }
  0x6e   :  { %587 = vxpose.xlu1.b32.cont [13/16] (narrow) %v1259_v18, 16 }
  0x72   :  { %588 = vxpose.xlu1.b32.cont [14/16] (narrow) %v1264_v19, 16 }
  0x76   :  { %589 = vxpose.xlu1.b32.cont [15/16] (narrow) %v1304_v35, 16 }
  0x7a   :  { %590 = vxpose.xlu1.b32.end [16/16] (narrow) %v1309_v36, 16 }
  0x82   :  { %v623_v1 = vpop.trf.xlu1 }
  0x83   :  { %778 = vmatprep.mubr.f32.mxu1 %v623_v1 }
  0x86   :  { %v954_v10 = vpop.trf.xlu0  ;;  %v624_v41 = vpop.trf.xlu1 }
  0x87   :  { %v955_v11 = vunpack.i.l.bf16 %v954_v10  ;;  %v958_v20 = vunpack.i.h.bf16 %v954_v10 }
  0x89   :  { %703 = vmatprep.mubr.f32.mxu0 %v955_v11 }
  0x8a   :  { %v959_v21 = vpop.trf.xlu0  ;;  %704 = vmatmul.mubr.f32.vlgmr.msra.gmra.mrb[0].mxu0 %v958_v20 }
  0x8b   :  { %v963_v31 = vunpack.i.h.bf16 %v959_v21  ;;  %v960_v32 = vunpack.i.l.bf16 %v959_v21 }
  0x8d   :  { %708 = vmatprep.mubr.f32.mxu0 %v960_v32 }
  0x8e   :  { %709 = vmatmul.mubr.f32.gmra.mrb[2].mxu0 %v963_v31 }
  0xbe   :  { %v591_v43 = vpop.trf.xlu1 }
  0xbf   :  { %779 = vmatmul.mubr.f32.vlgmr.msra.gmra.mrb[0].mxu1 %v591_v43 }
  0xc0   :  { %783 = vmatprep.mubr.f32.mxu1 %v624_v41 }
  0xc2   :  { %v592_v44 = vpop.trf.xlu1 }
  0xc3   :  { %784 = vmatmul.mubr.f32.gmra.mrb[2].mxu1 %v592_v44 }
 0x15d   :  { %v837_v54 = vpop.f32.mrb[0].mxu0 }
 0x15e   :  { %v838_v55 = vpop.f32.mrb[1].mxu0 }
 0x15f   :  { %v839_v3 = vadd.f32 %v838_v55, %v837_v54 }
 0x161   :  { %v840_v4 = vpop.f32.mrb[2].mxu0 }
 0x162   :  { %v841_v5 = vpop.f32.mrb[3].mxu0 }
 0x163   :  { %v842_v7 = vadd.f32 %v841_v5, %v840_v4 }
 0x192   :  { %v780_v9 = vpop.f32.mrb[0].mxu1 }
 0x193   :  { %v781_v12 = vadd.f32 %v839_v3, %v780_v9  ;;  %v782_v13 = vpop.f32.mrb[1].mxu1 }
 0x195   :  { %v789_v14 = vadd.f32 %v781_v12, %v509_v8 }
 0x196   :  { %v785_v16 = vpop.f32.mrb[2].mxu1 }
 0x197   :  { %792 = vst.msk [vmem:[%s1400_s1] sm:$0xff] %vm54_vm0, %v789_v14  ;;  %v786_v17 = vadd.f32 %v842_v7, %v785_v16  ;;  %v787_v18 = vpop.f32.mrb[3].mxu1 }
 0x199   :  { %v790_v19 = vadd.f32 %v786_v17, %v510_v15 }
 0x19b   :  { %793 = vst.msk [vmem:[%s1400_s1 + $0x8] sm:$0xff] %vm54_vm0, %v790_v19 }

// kernel: custom-call.9
= control target key start
LH: loop header
LB: loop body
LE: loop exit
PB: predicated region body
PF: predicated region fallthrough
CT: control target
= control target key end

     0   :  { %v38_v0 = vlaneseq  ;;  %v331_v10 = vmov -1.0   ;;  %v332_v47 = vmov 0.0   ;;  %s434_s0 = inlined_call_operand.vmem [shape: f32[1,16,16], index: 0, kind: input, shape index: {}]   ;;  %s435_s1 = inlined_call_operand.vmem [shape: f32[1,16,16], index: 1, kind: output, shape index: {}]  }
   0x1   :  { %v33_v3 = vld [vmem:[%s434_s0 + $0x8] sm:$0xff]  ;;  %v31_v36 = vld [vmem:[%s434_s0] sm:$0xff] }
   0x2   :  { %v343_v1 = vand.u32 127, %v38_v0  ;;  %v345_v2 = vshrl.u32 %v38_v0, 7 }
   0x4   :  { %vm40_vm0 = vcmp.lt.s32.totalorder %v343_v1, 16  ;;  %v59_v4 = vadd.s32 8, %v345_v2  ;;  %vm86_vm4 = vcmp.eq.s32.totalorder %v343_v1, 15  ;;  %vm94_vm6 = vcmp.eq.s32.totalorder %v343_v1, 14 }
   0x5   :  { %v87_v11 = vsel %vm86_vm4, 1.0, %v331_v10  ;;  %vm104_vm7 = vcmp.eq.s32.totalorder %v343_v1, 13  ;;  %vm114_vm8 = vcmp.eq.s32.totalorder %v343_v1, 12  ;;  %vm124_vm9 = vcmp.eq.s32.totalorder %v343_v1, 11 }
   0x6   :  { %vm60_vm1 = vcmp.eq.s32.totalorder %v59_v4, %v343_v1  ;;  %vm65_vm2 = vcmp.le.s32.totalorder %v59_v4, %v343_v1  ;;  %vm83_vm5 = vcmp.eq.s32.totalorder %v343_v1, %v59_v4  ;;  %vm44_vm10 = vcmp.eq.s32.totalorder %v345_v2, %v343_v1 }
   0x7   :  { %v62_v5 = vsel %vm60_vm1, %v33_v3, 0.0  ;;  %vm66_vm3 = vmand %vm65_vm2, %vm40_vm0  ;;  %v88_v12 = vsel %vm83_vm5, %v87_v11, 0.0  ;;  %v46_v37 = vsel %vm44_vm10, %v31_v36, 0.0  ;;  %vm134_vm11 = vcmp.eq.s32.totalorder %v343_v1, 10 }
   0x8   :  { %v67_v6 = vsel %vm66_vm3, %v33_v3, 0.0  ;;  %63 = vadd.xlane.f32.xlu0 %v62_v5  ;;  %vm49_vm12 = vcmp.le.s32.totalorder %v345_v2, %v343_v1  ;;  %vm76_vm14 = vcmp.eq.s32.totalorder %v343_v1, %v345_v2  ;;  %vm144_vm15 = vcmp.eq.s32.totalorder %v343_v1, 9 }
   0x9   :  { %vm50_vm13 = vmand %vm49_vm12, %vm40_vm0  ;;  %v77_v48 = vsel %vm76_vm14, -1.0, %v332_v47  ;;  %vm164_vm0 = vcmp.eq.s32.totalorder %v343_v1, 7  ;;  %vm154_vm1 = vcmp.eq.s32.totalorder %v343_v1, 8  ;;  %vm178_vm2 = vcmp.eq.s32.totalorder %v343_v1, 6 }
   0xa   :  { %v51_v44 = vsel %vm50_vm13, %v31_v36, 0.0  ;;  %vm192_vm3 = vcmp.eq.s32.totalorder %v343_v1, 5  ;;  %vm206_vm4 = vcmp.eq.s32.totalorder %v343_v1, 4  ;;  %vm220_vm5 = vcmp.eq.s32.totalorder %v343_v1, 3 }
  0x95   :  { %v356_v7 = vpop.xlane.xlu0 %63 }
  0x96   :  { %327 = vrcp.f32 %v356_v7  ;;  %vm277_vm10 = vweird.f32 %v356_v7 }
  0xa0   :  { %v359_v8 = vpop.eup %327 }
  0xa1   :  { %v69_v9 = vmul.f32 %v359_v8, %v67_v6 }
  0xa3   :  { %70 = vst [vmem:[#allocation2 + $0x8] sm:$0xff] %v69_v9 }
  0xaa   :  { %v90_v13 = vld [vmem:[#allocation2 + $0xe] ss:$0 sm:$0xff]  ;;  %v100_v16 = vld [vmem:[#allocation2 + $0xd] ss:$0 sm:$0xff]  ;;  %v110_v21 = vld [vmem:[#allocation2 + $0xc] ss:$0 sm:$0xff] }
  0xab   :  { %v91_v14 = vxor.u32 2147483648, %v90_v13  ;;  %v101_v18 = vxor.u32 2147483648, %v100_v16  ;;  %v111_v23 = vxor.u32 2147483648, %v110_v21  ;;  %v120_v26 = vld [vmem:[#allocation2 + $0xb] ss:$0 sm:$0xff] }
  0xac   :  { %v121_v28 = vxor.u32 2147483648, %v120_v26  ;;  %v130_v31 = vld [vmem:[#allocation2 + $0xa] ss:$0 sm:$0xff]  ;;  %v140_v38 = vld [vmem:[#allocation2 + $0x9] ss:$0 sm:$0xff] }
  0xad   :  { %v95_v15 = vmul.f32 %v91_v14, %v88_v12  ;;  %v131_v33 = vxor.u32 2147483648, %v130_v31  ;;  %v141_v40 = vxor.u32 2147483648, %v140_v38  ;;  %v150_v52 = vld [vmem:[#allocation2 + $0x8] ss:$0 sm:$0xff] }
  0xae   :  { %v151_v54 = vxor.u32 2147483648, %v150_v52 }
  0xaf   :  { %96 = vadd.xlane.f32.xlu0 %v95_v15 }
 0x13c   :  { %v97_v17 = vpop.xlane.xlu0 %96 }
 0x13d   :  { %v98_v19 = vsel %vm94_vm6, %v97_v17, %v88_v12  ;;  %vm234_vm6 = vcmp.eq.s32.totalorder %v343_v1, 2 }
 0x13e   :  { %v105_v20 = vmul.f32 %v101_v18, %v98_v19 }
 0x140   :  { %106 = vadd.xlane.f32.xlu1 %v105_v20 }
 0x1cd   :  { %v107_v22 = vpop.xlane.xlu1 %106 }
 0x1ce   :  { %v108_v24 = vsel %vm104_vm7, %v107_v22, %v98_v19  ;;  %vm248_vm7 = vcmp.eq.s32.totalorder %v343_v1, 1 }
 0x1cf   :  { %v115_v25 = vmul.f32 %v111_v23, %v108_v24 }
 0x1d1   :  { %116 = vadd.xlane.f32.xlu1 %v115_v25 }
 0x25e   :  { %v117_v27 = vpop.xlane.xlu1 %116 }
 0x25f   :  { %v118_v29 = vsel %vm114_vm8, %v117_v27, %v108_v24  ;;  %vm261_vm8 = vcmp.eq.s32.totalorder %v343_v1, 0 }
 0x260   :  { %v125_v30 = vmul.f32 %v121_v28, %v118_v29 }
 0x262   :  { %126 = vadd.xlane.f32.xlu0 %v125_v30 }
 0x2ef   :  { %v127_v32 = vpop.xlane.xlu0 %126 }
 0x2f0   :  { %v128_v34 = vsel %vm124_vm9, %v127_v32, %v118_v29 }
 0x2f1   :  { %v135_v35 = vmul.f32 %v131_v33, %v128_v34 }
 0x2f3   :  { %136 = vadd.xlane.f32.xlu1 %v135_v35 }
 0x2f7   :  { %47 = vadd.xlane.f32.xlu1 %v46_v37 }
 0x380   :  { %v137_v39 = vpop.xlane.xlu1 %136 }
 0x381   :  { %v138_v41 = vsel %vm134_vm11, %v137_v39, %v128_v34 }
 0x382   :  { %v145_v42 = vmul.f32 %v141_v40, %v138_v41 }
 0x384   :  { %146 = vadd.xlane.f32.xlu0 %v145_v42  ;;  %v374_v43 = vpop.xlane.xlu1 %47 }
 0x385   :  { %329 = vrcp.f32 %v374_v43  ;;  %vm272_vm9 = vweird.f32 %v374_v43 }
 0x38f   :  { %v381_v45 = vpop.eup %329 }
 0x390   :  { %v53_v46 = vmul.f32 %v381_v45, %v51_v44 }
 0x392   :  { %54 = vst [vmem:[#allocation2] sm:$0xff] %v53_v46 }
 0x399   :  { %v160_v49 = vld [vmem:[#allocation2 + $0x7] ss:$0 sm:$0xff]  ;;  %v174_v57 = vld [vmem:[#allocation2 + $0x6] ss:$0 sm:$0xff]  ;;  %v188_v2 = vld [vmem:[#allocation2 + $0x5] ss:$0 sm:$0xff] }
 0x39a   :  { %v161_v50 = vxor.u32 2147483648, %v160_v49  ;;  %v175_v58 = vxor.u32 2147483648, %v174_v57  ;;  %v189_v4 = vxor.u32 2147483648, %v188_v2  ;;  %v202_v12 = vld [vmem:[#allocation2 + $0x4] ss:$0 sm:$0xff] }
 0x39b   :  { %v203_v14 = vxor.u32 2147483648, %v202_v12  ;;  %v216_v20 = vld [vmem:[#allocation2 + $0x3] ss:$0 sm:$0xff]  ;;  %v230_v28 = vld [vmem:[#allocation2 + $0x2] ss:$0 sm:$0xff] }
 0x39c   :  { %v165_v51 = vmul.f32 %v161_v50, %v77_v48  ;;  %v217_v22 = vxor.u32 2147483648, %v216_v20  ;;  %v231_v30 = vxor.u32 2147483648, %v230_v28  ;;  %v244_v36 = vld [vmem:[#allocation2 + $0x1] ss:$0 sm:$0xff]  ;;  %v257_v46 = vld [vmem:[#allocation2] ss:$0 sm:$0xff] }
 0x39d   :  { %v245_v38 = vxor.u32 2147483648, %v244_v36 }
 0x39e   :  { %166 = vadd.xlane.f32.xlu1 %v165_v51 }
 0x411   :  { %v147_v53 = vpop.xlane.xlu0 %146 }
 0x412   :  { %v148_v55 = vsel %vm144_vm15, %v147_v53, %v138_v41 }
 0x413   :  { %v155_v56 = vmul.f32 %v151_v54, %v148_v55 }
 0x415   :  { %156 = vadd.xlane.f32.xlu0 %v155_v56 }
 0x42b   :  { %v167_v59 = vpop.xlane.xlu1 %166 }
 0x42c   :  { %v168_v60 = vsel %vm164_vm0, %v167_v59, %v77_v48  ;;  %v258_v48 = vxor.u32 2147483648, %v257_v46 }
 0x42d   :  { %v179_v61 = vmul.f32 %v175_v58, %v168_v60 }
 0x42f   :  { %180 = vadd.xlane.f32.xlu1 %v179_v61 }
 0x4a2   :  { %v157_v62 = vpop.xlane.xlu0 %156 }
 0x4a3   :  { %v158_v63 = vsel %vm154_vm1, %v157_v62, %v148_v55 }
 0x4a4   :  { %v169_v0 = vmul.f32 %v161_v50, %v158_v63 }
 0x4a6   :  { %170 = vadd.xlane.f32.xlu0 %v169_v0 }
 0x4bc   :  { %v181_v3 = vpop.xlane.xlu1 %180 }
 0x4bd   :  { %v182_v5 = vsel %vm178_vm2, %v181_v3, %v168_v60 }
 0x4be   :  { %v193_v6 = vmul.f32 %v189_v4, %v182_v5 }
 0x4c0   :  { %194 = vadd.xlane.f32.xlu1 %v193_v6 }
 0x533   :  { %v171_v9 = vpop.xlane.xlu0 %170 }
 0x534   :  { %v172_v10 = vsel %vm164_vm0, %v171_v9, %v158_v63 }
 0x535   :  { %v183_v11 = vmul.f32 %v175_v58, %v172_v10 }
 0x537   :  { %184 = vadd.xlane.f32.xlu0 %v183_v11 }
 0x54d   :  { %v195_v13 = vpop.xlane.xlu1 %194 }
 0x54e   :  { %v196_v15 = vsel %vm192_vm3, %v195_v13, %v182_v5 }
 0x54f   :  { %v207_v16 = vmul.f32 %v203_v14, %v196_v15 }
 0x551   :  { %208 = vadd.xlane.f32.xlu1 %v207_v16 }
 0x5c4   :  { %v185_v17 = vpop.xlane.xlu0 %184 }
 0x5c5   :  { %v186_v18 = vsel %vm178_vm2, %v185_v17, %v172_v10 }
 0x5c6   :  { %v197_v19 = vmul.f32 %v189_v4, %v186_v18 }
 0x5c8   :  { %198 = vadd.xlane.f32.xlu0 %v197_v19 }
 0x5de   :  { %v209_v21 = vpop.xlane.xlu1 %208 }
 0x5df   :  { %v210_v23 = vsel %vm206_vm4, %v209_v21, %v196_v15 }
 0x5e0   :  { %v221_v24 = vmul.f32 %v217_v22, %v210_v23 }
 0x5e2   :  { %222 = vadd.xlane.f32.xlu1 %v221_v24 }
 0x655   :  { %v199_v25 = vpop.xlane.xlu0 %198 }
 0x656   :  { %v200_v26 = vsel %vm192_vm3, %v199_v25, %v186_v18 }
 0x657   :  { %v211_v27 = vmul.f32 %v203_v14, %v200_v26 }
 0x659   :  { %212 = vadd.xlane.f32.xlu0 %v211_v27 }
 0x66f   :  { %v223_v29 = vpop.xlane.xlu1 %222 }
 0x670   :  { %v224_v31 = vsel %vm220_vm5, %v223_v29, %v210_v23 }
 0x671   :  { %v235_v32 = vmul.f32 %v231_v30, %v224_v31 }
 0x673   :  { %236 = vadd.xlane.f32.xlu1 %v235_v32 }
 0x6e6   :  { %v213_v33 = vpop.xlane.xlu0 %212 }
 0x6e7   :  { %v214_v34 = vsel %vm206_vm4, %v213_v33, %v200_v26 }
 0x6e8   :  { %v225_v35 = vmul.f32 %v217_v22, %v214_v34 }
 0x6ea   :  { %226 = vadd.xlane.f32.xlu0 %v225_v35 }
 0x700   :  { %v237_v37 = vpop.xlane.xlu1 %236 }
 0x701   :  { %v238_v39 = vsel %vm234_vm6, %v237_v37, %v224_v31 }
 0x702   :  { %v249_v40 = vmul.f32 %v245_v38, %v238_v39 }
 0x704   :  { %250 = vadd.xlane.f32.xlu1 %v249_v40 }
 0x777   :  { %v227_v41 = vpop.xlane.xlu0 %226 }
 0x778   :  { %v228_v42 = vsel %vm220_vm5, %v227_v41, %v214_v34 }
 0x779   :  { %v239_v44 = vmul.f32 %v231_v30, %v228_v42 }
 0x77b   :  { %240 = vadd.xlane.f32.xlu0 %v239_v44 }
 0x791   :  { %v251_v47 = vpop.xlane.xlu1 %250 }
 0x792   :  { %v252_v49 = vsel %vm248_vm7, %v251_v47, %v238_v39 }
 0x793   :  { %v262_v50 = vmul.f32 %v258_v48, %v252_v49 }
 0x795   :  { %263 = vadd.xlane.f32.xlu1 %v262_v50 }
 0x808   :  { %v241_v51 = vpop.xlane.xlu0 %240 }
 0x809   :  { %v242_v52 = vsel %vm234_vm6, %v241_v51, %v228_v42 }
 0x80a   :  { %v253_v53 = vmul.f32 %v245_v38, %v242_v52 }
 0x80c   :  { %254 = vadd.xlane.f32.xlu0 %v253_v53 }
 0x822   :  { %v264_v54 = vpop.xlane.xlu1 %263 }
 0x823   :  { %v265_v55 = vsel %vm261_vm8, %v264_v54, %v252_v49 }
 0x824   :  { %v271_v56 = vmul.f32 %v381_v45, %v265_v55 }
 0x826   :  { %v273_v57 = vsel %vm272_vm9, %v265_v55, %v271_v56 }
 0x827   :  { %311 = vst [vmem:[%s435_s1] sm:$0xff] %v273_v57 }
 0x899   :  { %v255_v58 = vpop.xlane.xlu0 %254 }
 0x89a   :  { %v256_v59 = vsel %vm248_vm7, %v255_v58, %v242_v52 }
 0x89b   :  { %v266_v60 = vmul.f32 %v258_v48, %v256_v59 }
 0x89d   :  { %267 = vadd.xlane.f32.xlu0 %v266_v60 }
 0x92a   :  { %v268_v61 = vpop.xlane.xlu0 %267 }
 0x92b   :  { %v269_v62 = vsel %vm261_vm8, %v268_v61, %v256_v59 }
 0x92c   :  { %v276_v63 = vmul.f32 %v359_v8, %v269_v62 }
 0x92e   :  { %v278_v45 = vsel %vm277_vm10, %v269_v62, %v276_v63 }
 0x92f   :  { %313 = vst [vmem:[%s435_s1 + $0x8] sm:$0xff] %v278_v45 }

</bundles_post_ra>
